<compile_context>
chip_gen: v7x
topology: tpu7x:2x2x1
jax: 0.10.0
libtpu: 0.0.40
codegen_flags: <defaults>
</compile_context>

<pallas_src>
import jax
import jax.numpy as jnp
from jax.experimental import pallas as pl
from jax.experimental.pallas import tpu as pltpu


HIDDEN = 20        # hidden_size in the reference script
INPUT_SIZE = 1     # input_size in the reference script
NUM_LAYERS = 2     # num_stacked_layers in the reference script


def _ensemble_kernel(
    x_ref,          # (T, B, 1)  time-major input
    # --- LSTM params (gate-fused layout, gate order i|f|g|o) ---
    l_wih0_ref,     # (1, 4H)   layer-0 input weights
    l_whh0_ref,     # (H, 4H)   layer-0 recurrent weights
    l_b0_ref,       # (1, 4H)   layer-0 bias (b_ih + b_hh)
    l_w1_ref,       # (2H, 4H)  layer-1 [W_ih ; W_hh] stacked for [h0|h1]
    l_b1_ref,       # (1, 4H)
    # --- RNN (tanh) params ---
    r_wih0_ref,     # (1, H)
    r_whh0_ref,     # (H, H)
    r_b0_ref,       # (1, H)
    r_w1_ref,       # (2H, H)   layer-1 [W_ih ; W_hh] stacked for [r0|r1]
    r_b1_ref,       # (1, H)
    # --- fused ensemble head ---
    fcw_ref,        # (2H, 1)   [lstm_fc_w ; rnn_fc_w]
    fcb_ref,        # (1, 1)    lstm_fc_b + rnn_fc_b
    out_ref,        # (B, 1)
):
    T, B, _ = x_ref.shape
    H = r_whh0_ref.shape[0]

    # Hoist all (tiny) weight loads out of the recurrence.
    l_whh0 = l_whh0_ref[...]
    l_w1 = l_w1_ref[...]
    l_b1 = l_b1_ref[...]
    r_whh0 = r_whh0_ref[...]
    r_w1 = r_w1_ref[...]
    r_b1 = r_b1_ref[...]

    # input_size == 1  ->  layer-0 input projections for every timestep are a
    # single broadcast multiply (off the sequential critical path). Biases are
    # folded in here so no per-step bias broadcast is needed for layer 0.
    x = x_ref[...]                                                # (T, B, 1)
    xl0 = x * l_wih0_ref[...][None] + l_b0_ref[...][None]         # (T, B, 4H)
    xr0 = x * r_wih0_ref[...][None] + r_b0_ref[...][None]         # (T, B, H)

    def lstm_gates(gates, c):
        # static lane slices of the fused (B, 4H) pre-activations
        i = jax.nn.sigmoid(gates[:, 0 * H:1 * H])
        f = jax.nn.sigmoid(gates[:, 1 * H:2 * H])
        g = jnp.tanh(gates[:, 2 * H:3 * H])
        o = jax.nn.sigmoid(gates[:, 3 * H:4 * H])
        c_new = f * c + i * g
        h_new = o * jnp.tanh(c_new)
        return h_new, c_new

    zeros = jnp.zeros((B, H), jnp.float32)
    h0 = c0 = h1 = c1 = r0 = r1 = zeros

    # T is a trace-time constant: fully unrolled loop (static slices of the
    # precomputed projections, scheduler sees both recurrent chains at once).
    for t in range(T):
        # LSTM layer 0: single fused-gate (B,H)x(H,4H) matmul.
        g0 = xl0[t] + jnp.dot(h0, l_whh0, preferred_element_type=jnp.float32)
        h0, c0 = lstm_gates(g0, c0)

        # LSTM layer 1: one (B,2H)x(2H,4H) matmul over [h0_new | h1_old].
        g1 = jnp.dot(jnp.concatenate([h0, h1], axis=-1), l_w1,
                     preferred_element_type=jnp.float32) + l_b1
        h1, c1 = lstm_gates(g1, c1)

        # RNN (tanh) layer 0: recurrent matmul only (input proj precomputed).
        r0 = jnp.tanh(xr0[t] + jnp.dot(r0, r_whh0,
                                       preferred_element_type=jnp.float32))
        # RNN layer 1: one (B,2H)x(2H,H) matmul over [r0_new | r1_old].
        r1 = jnp.tanh(jnp.dot(jnp.concatenate([r0, r1], axis=-1), r_w1,
                              preferred_element_type=jnp.float32) + r_b1)

    # Fused heads: relu(((h1 @ Wl + bl) + (r1 @ Wr + br)) / 2)
    head_in = jnp.concatenate([h1, r1], axis=-1)                  # (B, 2H)
    combined = 0.5 * (jnp.dot(head_in, fcw_ref[...],
                              preferred_element_type=jnp.float32) + fcb_ref[...])
    out_ref[...] = jnp.maximum(combined, 0.0)


def init_params(key, hidden=HIDDEN, input_size=INPUT_SIZE):
    """PyTorch-layout parameters, uniform(-1/sqrt(H), 1/sqrt(H)) init."""
    H = hidden
    bound = 1.0 / (H ** 0.5)
    keys = iter(jax.random.split(key, 20))

    def u(shape):
        return jax.random.uniform(next(keys), shape, jnp.float32, -bound, bound)

    return {
        # nn.LSTM (gate order i, f, g, o), weights are (out, in) like PyTorch
        "lstm.w_ih_l0": u((4 * H, input_size)),
        "lstm.w_hh_l0": u((4 * H, H)),
        "lstm.b_ih_l0": u((4 * H,)),
        "lstm.b_hh_l0": u((4 * H,)),
        "lstm.w_ih_l1": u((4 * H, H)),
        "lstm.w_hh_l1": u((4 * H, H)),
        "lstm.b_ih_l1": u((4 * H,)),
        "lstm.b_hh_l1": u((4 * H,)),
        "lstm.fc_w": u((1, H)),
        "lstm.fc_b": u((1,)),
        # nn.RNN (tanh)
        "rnn.w_ih_l0": u((H, input_size)),
        "rnn.w_hh_l0": u((H, H)),
        "rnn.b_ih_l0": u((H,)),
        "rnn.b_hh_l0": u((H,)),
        "rnn.w_ih_l1": u((H, H)),
        "rnn.w_hh_l1": u((H, H)),
        "rnn.b_ih_l1": u((H,)),
        "rnn.b_hh_l1": u((H,)),
        "rnn.fc_w": u((1, H)),
        "rnn.fc_b": u((1,)),
    }


def pack_params(p):
    """Repack PyTorch-layout weights into the fused kernel layout."""
    def t(w):  # (out, in) -> (in, out)
        return jnp.asarray(w, jnp.float32).T

    return {
        "l_wih0": t(p["lstm.w_ih_l0"]),                                      # (1, 4H)
        "l_whh0": t(p["lstm.w_hh_l0"]),                                      # (H, 4H)
        "l_b0": (p["lstm.b_ih_l0"] + p["lstm.b_hh_l0"])[None, :],            # (1, 4H)
        "l_w1": jnp.concatenate(
            [t(p["lstm.w_ih_l1"]), t(p["lstm.w_hh_l1"])], axis=0),           # (2H, 4H)
        "l_b1": (p["lstm.b_ih_l1"] + p["lstm.b_hh_l1"])[None, :],            # (1, 4H)
        "r_wih0": t(p["rnn.w_ih_l0"]),                                       # (1, H)
        "r_whh0": t(p["rnn.w_hh_l0"]),                                       # (H, H)
        "r_b0": (p["rnn.b_ih_l0"] + p["rnn.b_hh_l0"])[None, :],              # (1, H)
        "r_w1": jnp.concatenate(
            [t(p["rnn.w_ih_l1"]), t(p["rnn.w_hh_l1"])], axis=0),             # (2H, H)
        "r_b1": (p["rnn.b_ih_l1"] + p["rnn.b_hh_l1"])[None, :],              # (1, H)
        "fcw": jnp.concatenate([t(p["lstm.fc_w"]), t(p["rnn.fc_w"])], axis=0),  # (2H, 1)
        "fcb": (p["lstm.fc_b"] + p["rnn.fc_b"])[None, :],                    # (1, 1)
    }


@jax.jit
def ensemble_forward(x, packed):
    """x: (batch, seq, 1) float32  ->  (batch, 1) float32"""
    B, T, _ = x.shape
    x_tm = jnp.transpose(x.astype(jnp.float32), (1, 0, 2))  # time-major (T, B, 1)

    args = (
        x_tm,
        packed["l_wih0"], packed["l_whh0"], packed["l_b0"],
        packed["l_w1"], packed["l_b1"],
        packed["r_wih0"], packed["r_whh0"], packed["r_b0"],
        packed["r_w1"], packed["r_b1"],
        packed["fcw"], packed["fcb"],
    )
    vmem = pl.BlockSpec(memory_space=pltpu.MemorySpace.VMEM)
    return pl.pallas_call(
        _ensemble_kernel,
        out_shape=jax.ShapeDtypeStruct((B, 1), jnp.float32),
        in_specs=[vmem] * len(args),
        out_specs=vmem,
    )(*args)


def ensemble_reference(x, p):
    """Pure-JAX reference with PyTorch nn.LSTM / nn.RNN semantics."""
    B, T, _ = x.shape
    H = HIDDEN

    def lstm_cell(x_t, h, c, w_ih, w_hh, b_ih, b_hh):
        gates = x_t @ w_ih.T + b_ih + h @ w_hh.T + b_hh
        i = jax.nn.sigmoid(gates[:, 0:H])
        f = jax.nn.sigmoid(gates[:, H:2 * H])
        g = jnp.tanh(gates[:, 2 * H:3 * H])
        o = jax.nn.sigmoid(gates[:, 3 * H:4 * H])
        c = f * c + i * g
        return o * jnp.tanh(c), c

    def rnn_cell(x_t, h, w_ih, w_hh, b_ih, b_hh):
        return jnp.tanh(x_t @ w_ih.T + b_ih + h @ w_hh.T + b_hh)

    h0 = c0 = h1 = c1 = r0 = r1 = jnp.zeros((B, H), jnp.float32)
    for t in range(T):
        x_t = x[:, t, :]
        h0, c0 = lstm_cell(x_t, h0, c0, p["lstm.w_ih_l0"], p["lstm.w_hh_l0"],
                           p["lstm.b_ih_l0"], p["lstm.b_hh_l0"])
        h1, c1 = lstm_cell(h0, h1, c1, p["lstm.w_ih_l1"], p["lstm.w_hh_l1"],
                           p["lstm.b_ih_l1"], p["lstm.b_hh_l1"])
        r0 = rnn_cell(x_t, r0, p["rnn.w_ih_l0"], p["rnn.w_hh_l0"],
                      p["rnn.b_ih_l0"], p["rnn.b_hh_l0"])
        r1 = rnn_cell(r0, r1, p["rnn.w_ih_l1"], p["rnn.w_hh_l1"],
                      p["rnn.b_ih_l1"], p["rnn.b_hh_l1"])
    lstm_out = h1 @ p["lstm.fc_w"].T + p["lstm.fc_b"]
    rnn_out = r1 @ p["rnn.fc_w"].T + p["rnn.fc_b"]
    return jnp.maximum((rnn_out + lstm_out) * 0.5, 0.0)


if __name__ == "__main__":
    key = jax.random.PRNGKey(0)
    k_param, k_x = jax.random.split(key)

    B, T = 8, 8  # small batch / sequence; feature dim = 1 as in the module
    x = jax.random.normal(k_x, (B, T, INPUT_SIZE), jnp.float32)

    params = init_params(k_param)       # PyTorch-layout params
    packed = pack_params(params)        # fused kernel layout

    out = jax.block_until_ready(ensemble_forward(x, packed))
    ref = ensemble_reference(x, params)

    assert out.shape == (B, 1), out.shape
    assert jnp.allclose(out, ref, atol=1e-5, rtol=1e-5), (out, ref)

    print("KERNEL_OK")
</pallas_src>

<mosaic_0001>
module attributes {stable_mosaic.version = 11 : i64} {
  func.func @_ensemble_kernel(%arg0: memref<8x8x1xf32, #tpu.memory_space<vmem>>, %arg1: memref<1x80xf32, #tpu.memory_space<vmem>>, %arg2: memref<20x80xf32, #tpu.memory_space<vmem>>, %arg3: memref<1x80xf32, #tpu.memory_space<vmem>>, %arg4: memref<40x80xf32, #tpu.memory_space<vmem>>, %arg5: memref<1x80xf32, #tpu.memory_space<vmem>>, %arg6: memref<1x20xf32, #tpu.memory_space<vmem>>, %arg7: memref<20x20xf32, #tpu.memory_space<vmem>>, %arg8: memref<1x20xf32, #tpu.memory_space<vmem>>, %arg9: memref<40x20xf32, #tpu.memory_space<vmem>>, %arg10: memref<1x20xf32, #tpu.memory_space<vmem>>, %arg11: memref<40x1xf32, #tpu.memory_space<vmem>>, %arg12: memref<1x1xf32, #tpu.memory_space<vmem>>, %arg13: memref<8x1xf32, #tpu.memory_space<vmem>>) attributes {dimension_semantics = [], scalar_prefetch = 0 : i64, scratch_operands = 0 : i64, tpu.core_type = #tpu.core_type<tc>} {
    %c0 = arith.constant 0 : index
    %c0_0 = arith.constant 0 : index
    %0 = vector.load %arg2[%c0, %c0_0] : memref<20x80xf32, #tpu.memory_space<vmem>>, vector<20x80xf32>
    %c0_1 = arith.constant 0 : index
    %c0_2 = arith.constant 0 : index
    %1 = vector.load %arg4[%c0_1, %c0_2] : memref<40x80xf32, #tpu.memory_space<vmem>>, vector<40x80xf32>
    %c0_3 = arith.constant 0 : index
    %c0_4 = arith.constant 0 : index
    %2 = vector.load %arg5[%c0_3, %c0_4] : memref<1x80xf32, #tpu.memory_space<vmem>>, vector<1x80xf32>
    %c0_5 = arith.constant 0 : index
    %c0_6 = arith.constant 0 : index
    %3 = vector.load %arg7[%c0_5, %c0_6] : memref<20x20xf32, #tpu.memory_space<vmem>>, vector<20x20xf32>
    %c0_7 = arith.constant 0 : index
    %c0_8 = arith.constant 0 : index
    %4 = vector.load %arg9[%c0_7, %c0_8] : memref<40x20xf32, #tpu.memory_space<vmem>>, vector<40x20xf32>
    %c0_9 = arith.constant 0 : index
    %c0_10 = arith.constant 0 : index
    %5 = vector.load %arg10[%c0_9, %c0_10] : memref<1x20xf32, #tpu.memory_space<vmem>>, vector<1x20xf32>
    %c0_11 = arith.constant 0 : index
    %c0_12 = arith.constant 0 : index
    %c0_13 = arith.constant 0 : index
    %6 = vector.load %arg0[%c0_11, %c0_12, %c0_13] : memref<8x8x1xf32, #tpu.memory_space<vmem>>, vector<8x8x1xf32>
    %c0_14 = arith.constant 0 : index
    %c0_15 = arith.constant 0 : index
    %7 = vector.load %arg1[%c0_14, %c0_15] : memref<1x80xf32, #tpu.memory_space<vmem>>, vector<1x80xf32>
    %8 = vector.shape_cast %7 : vector<1x80xf32> to vector<1x1x80xf32>
    %9 = vector.broadcast %6 : vector<8x8x1xf32> to vector<8x8x80xf32>
    %10 = vector.broadcast %8 : vector<1x1x80xf32> to vector<8x8x80xf32>
    %11 = arith.mulf %9, %10 : vector<8x8x80xf32>
    %c0_16 = arith.constant 0 : index
    %c0_17 = arith.constant 0 : index
    %12 = vector.load %arg3[%c0_16, %c0_17] : memref<1x80xf32, #tpu.memory_space<vmem>>, vector<1x80xf32>
    %13 = vector.shape_cast %12 : vector<1x80xf32> to vector<1x1x80xf32>
    %14 = vector.broadcast %13 : vector<1x1x80xf32> to vector<8x8x80xf32>
    %15 = arith.addf %11, %14 : vector<8x8x80xf32>
    %c0_18 = arith.constant 0 : index
    %c0_19 = arith.constant 0 : index
    %16 = vector.load %arg6[%c0_18, %c0_19] : memref<1x20xf32, #tpu.memory_space<vmem>>, vector<1x20xf32>
    %17 = vector.shape_cast %16 : vector<1x20xf32> to vector<1x1x20xf32>
    %18 = vector.broadcast %6 : vector<8x8x1xf32> to vector<8x8x20xf32>
    %19 = vector.broadcast %17 : vector<1x1x20xf32> to vector<8x8x20xf32>
    %20 = arith.mulf %18, %19 : vector<8x8x20xf32>
    %c0_20 = arith.constant 0 : index
    %c0_21 = arith.constant 0 : index
    %21 = vector.load %arg8[%c0_20, %c0_21] : memref<1x20xf32, #tpu.memory_space<vmem>>, vector<1x20xf32>
    %22 = vector.shape_cast %21 : vector<1x20xf32> to vector<1x1x20xf32>
    %23 = vector.broadcast %22 : vector<1x1x20xf32> to vector<8x8x20xf32>
    %24 = arith.addf %20, %23 : vector<8x8x20xf32>
    %cst = arith.constant 0.000000e+00 : f32
    %25 = vector.broadcast %cst : f32 to vector<8x20xf32>
    %26 = vector.extract_strided_slice %15 {offsets = [0, 0, 0], sizes = [1, 8, 80], strides = [1, 1, 1]} : vector<8x8x80xf32> to vector<1x8x80xf32>
    %27 = vector.shape_cast %26 : vector<1x8x80xf32> to vector<8x80xf32>
    %cst_22 = arith.constant dense<0.000000e+00> : vector<8x80xf32>
    %28 = tpu.matmul %25, %0, %cst_22 {dimension_numbers = #tpu.dot_dimension_numbers<[1], [0], [0], [1], [0, 0, 1, 1], [], []>} : vector<8x20xf32>, vector<20x80xf32>, vector<8x80xf32> -> vector<8x80xf32>
    %29 = arith.addf %27, %28 : vector<8x80xf32>
    %30 = vector.extract_strided_slice %29 {offsets = [0, 0], sizes = [8, 20], strides = [1, 1]} : vector<8x80xf32> to vector<8x20xf32>
    %31 = arith.negf %30 : vector<8x20xf32>
    %32 = math.exp %31 : vector<8x20xf32>
    %cst_23 = arith.constant 1.000000e+00 : f32
    %33 = vector.broadcast %cst_23 : f32 to vector<8x20xf32>
    %34 = arith.addf %33, %32 : vector<8x20xf32>
    %35 = arith.divf %33, %34 : vector<8x20xf32>
    %36 = vector.extract_strided_slice %29 {offsets = [0, 20], sizes = [8, 20], strides = [1, 1]} : vector<8x80xf32> to vector<8x20xf32>
    %37 = arith.negf %36 : vector<8x20xf32>
    %38 = math.exp %37 : vector<8x20xf32>
    %cst_24 = arith.constant 1.000000e+00 : f32
    %39 = vector.broadcast %cst_24 : f32 to vector<8x20xf32>
    %40 = arith.addf %39, %38 : vector<8x20xf32>
    %41 = arith.divf %39, %40 : vector<8x20xf32>
    %42 = vector.extract_strided_slice %29 {offsets = [0, 40], sizes = [8, 20], strides = [1, 1]} : vector<8x80xf32> to vector<8x20xf32>
    %43 = math.tanh %42 : vector<8x20xf32>
    %44 = vector.extract_strided_slice %29 {offsets = [0, 60], sizes = [8, 20], strides = [1, 1]} : vector<8x80xf32> to vector<8x20xf32>
    %45 = arith.negf %44 : vector<8x20xf32>
    %46 = math.exp %45 : vector<8x20xf32>
    %cst_25 = arith.constant 1.000000e+00 : f32
    %47 = vector.broadcast %cst_25 : f32 to vector<8x20xf32>
    %48 = arith.addf %47, %46 : vector<8x20xf32>
    %49 = arith.divf %47, %48 : vector<8x20xf32>
    %50 = arith.mulf %41, %25 : vector<8x20xf32>
    %51 = arith.mulf %35, %43 : vector<8x20xf32>
    %52 = arith.addf %50, %51 : vector<8x20xf32>
    %53 = math.tanh %52 : vector<8x20xf32>
    %54 = arith.mulf %49, %53 : vector<8x20xf32>
    %55 = tpu.concatenate %54, %25 in 1 : vector<8x20xf32>, vector<8x20xf32> -> vector<8x40xf32>
    %cst_26 = arith.constant dense<0.000000e+00> : vector<8x80xf32>
    %56 = tpu.matmul %55, %1, %cst_26 {dimension_numbers = #tpu.dot_dimension_numbers<[1], [0], [0], [1], [0, 0, 1, 1], [], []>} : vector<8x40xf32>, vector<40x80xf32>, vector<8x80xf32> -> vector<8x80xf32>
    %57 = vector.broadcast %2 : vector<1x80xf32> to vector<8x80xf32>
    %58 = arith.addf %56, %57 : vector<8x80xf32>
    %59 = vector.extract_strided_slice %58 {offsets = [0, 0], sizes = [8, 20], strides = [1, 1]} : vector<8x80xf32> to vector<8x20xf32>
    %60 = arith.negf %59 : vector<8x20xf32>
    %61 = math.exp %60 : vector<8x20xf32>
    %cst_27 = arith.constant 1.000000e+00 : f32
    %62 = vector.broadcast %cst_27 : f32 to vector<8x20xf32>
    %63 = arith.addf %62, %61 : vector<8x20xf32>
    %64 = arith.divf %62, %63 : vector<8x20xf32>
    %65 = vector.extract_strided_slice %58 {offsets = [0, 20], sizes = [8, 20], strides = [1, 1]} : vector<8x80xf32> to vector<8x20xf32>
    %66 = arith.negf %65 : vector<8x20xf32>
    %67 = math.exp %66 : vector<8x20xf32>
    %cst_28 = arith.constant 1.000000e+00 : f32
    %68 = vector.broadcast %cst_28 : f32 to vector<8x20xf32>
    %69 = arith.addf %68, %67 : vector<8x20xf32>
    %70 = arith.divf %68, %69 : vector<8x20xf32>
    %71 = vector.extract_strided_slice %58 {offsets = [0, 40], sizes = [8, 20], strides = [1, 1]} : vector<8x80xf32> to vector<8x20xf32>
    %72 = math.tanh %71 : vector<8x20xf32>
    %73 = vector.extract_strided_slice %58 {offsets = [0, 60], sizes = [8, 20], strides = [1, 1]} : vector<8x80xf32> to vector<8x20xf32>
    %74 = arith.negf %73 : vector<8x20xf32>
    %75 = math.exp %74 : vector<8x20xf32>
    %cst_29 = arith.constant 1.000000e+00 : f32
    %76 = vector.broadcast %cst_29 : f32 to vector<8x20xf32>
    %77 = arith.addf %76, %75 : vector<8x20xf32>
    %78 = arith.divf %76, %77 : vector<8x20xf32>
    %79 = arith.mulf %70, %25 : vector<8x20xf32>
    %80 = arith.mulf %64, %72 : vector<8x20xf32>
    %81 = arith.addf %79, %80 : vector<8x20xf32>
    %82 = math.tanh %81 : vector<8x20xf32>
    %83 = arith.mulf %78, %82 : vector<8x20xf32>
    %84 = vector.extract_strided_slice %24 {offsets = [0, 0, 0], sizes = [1, 8, 20], strides = [1, 1, 1]} : vector<8x8x20xf32> to vector<1x8x20xf32>
    %85 = vector.shape_cast %84 : vector<1x8x20xf32> to vector<8x20xf32>
    %cst_30 = arith.constant dense<0.000000e+00> : vector<8x20xf32>
    %86 = tpu.matmul %25, %3, %cst_30 {dimension_numbers = #tpu.dot_dimension_numbers<[1], [0], [0], [1], [0, 0, 1, 1], [], []>} : vector<8x20xf32>, vector<20x20xf32>, vector<8x20xf32> -> vector<8x20xf32>
    %87 = arith.addf %85, %86 : vector<8x20xf32>
    %88 = math.tanh %87 : vector<8x20xf32>
    %89 = tpu.concatenate %88, %25 in 1 : vector<8x20xf32>, vector<8x20xf32> -> vector<8x40xf32>
    %cst_31 = arith.constant dense<0.000000e+00> : vector<8x20xf32>
    %90 = tpu.matmul %89, %4, %cst_31 {dimension_numbers = #tpu.dot_dimension_numbers<[1], [0], [0], [1], [0, 0, 1, 1], [], []>} : vector<8x40xf32>, vector<40x20xf32>, vector<8x20xf32> -> vector<8x20xf32>
    %91 = vector.broadcast %5 : vector<1x20xf32> to vector<8x20xf32>
    %92 = arith.addf %90, %91 : vector<8x20xf32>
    %93 = math.tanh %92 : vector<8x20xf32>
    %94 = vector.extract_strided_slice %15 {offsets = [1, 0, 0], sizes = [1, 8, 80], strides = [1, 1, 1]} : vector<8x8x80xf32> to vector<1x8x80xf32>
    %95 = vector.shape_cast %94 : vector<1x8x80xf32> to vector<8x80xf32>
    %cst_32 = arith.constant dense<0.000000e+00> : vector<8x80xf32>
    %96 = tpu.matmul %54, %0, %cst_32 {dimension_numbers = #tpu.dot_dimension_numbers<[1], [0], [0], [1], [0, 0, 1, 1], [], []>} : vector<8x20xf32>, vector<20x80xf32>, vector<8x80xf32> -> vector<8x80xf32>
    %97 = arith.addf %95, %96 : vector<8x80xf32>
    %98 = vector.extract_strided_slice %97 {offsets = [0, 0], sizes = [8, 20], strides = [1, 1]} : vector<8x80xf32> to vector<8x20xf32>
    %99 = arith.negf %98 : vector<8x20xf32>
    %100 = math.exp %99 : vector<8x20xf32>
    %cst_33 = arith.constant 1.000000e+00 : f32
    %101 = vector.broadcast %cst_33 : f32 to vector<8x20xf32>
    %102 = arith.addf %101, %100 : vector<8x20xf32>
    %103 = arith.divf %101, %102 : vector<8x20xf32>
    %104 = vector.extract_strided_slice %97 {offsets = [0, 20], sizes = [8, 20], strides = [1, 1]} : vector<8x80xf32> to vector<8x20xf32>
    %105 = arith.negf %104 : vector<8x20xf32>
    %106 = math.exp %105 : vector<8x20xf32>
    %cst_34 = arith.constant 1.000000e+00 : f32
    %107 = vector.broadcast %cst_34 : f32 to vector<8x20xf32>
    %108 = arith.addf %107, %106 : vector<8x20xf32>
    %109 = arith.divf %107, %108 : vector<8x20xf32>
    %110 = vector.extract_strided_slice %97 {offsets = [0, 40], sizes = [8, 20], strides = [1, 1]} : vector<8x80xf32> to vector<8x20xf32>
    %111 = math.tanh %110 : vector<8x20xf32>
    %112 = vector.extract_strided_slice %97 {offsets = [0, 60], sizes = [8, 20], strides = [1, 1]} : vector<8x80xf32> to vector<8x20xf32>
    %113 = arith.negf %112 : vector<8x20xf32>
    %114 = math.exp %113 : vector<8x20xf32>
    %cst_35 = arith.constant 1.000000e+00 : f32
    %115 = vector.broadcast %cst_35 : f32 to vector<8x20xf32>
    %116 = arith.addf %115, %114 : vector<8x20xf32>
    %117 = arith.divf %115, %116 : vector<8x20xf32>
    %118 = arith.mulf %109, %52 : vector<8x20xf32>
    %119 = arith.mulf %103, %111 : vector<8x20xf32>
    %120 = arith.addf %118, %119 : vector<8x20xf32>
    %121 = math.tanh %120 : vector<8x20xf32>
    %122 = arith.mulf %117, %121 : vector<8x20xf32>
    %123 = tpu.concatenate %122, %83 in 1 : vector<8x20xf32>, vector<8x20xf32> -> vector<8x40xf32>
    %cst_36 = arith.constant dense<0.000000e+00> : vector<8x80xf32>
    %124 = tpu.matmul %123, %1, %cst_36 {dimension_numbers = #tpu.dot_dimension_numbers<[1], [0], [0], [1], [0, 0, 1, 1], [], []>} : vector<8x40xf32>, vector<40x80xf32>, vector<8x80xf32> -> vector<8x80xf32>
    %125 = vector.broadcast %2 : vector<1x80xf32> to vector<8x80xf32>
    %126 = arith.addf %124, %125 : vector<8x80xf32>
    %127 = vector.extract_strided_slice %126 {offsets = [0, 0], sizes = [8, 20], strides = [1, 1]} : vector<8x80xf32> to vector<8x20xf32>
    %128 = arith.negf %127 : vector<8x20xf32>
    %129 = math.exp %128 : vector<8x20xf32>
    %cst_37 = arith.constant 1.000000e+00 : f32
    %130 = vector.broadcast %cst_37 : f32 to vector<8x20xf32>
    %131 = arith.addf %130, %129 : vector<8x20xf32>
    %132 = arith.divf %130, %131 : vector<8x20xf32>
    %133 = vector.extract_strided_slice %126 {offsets = [0, 20], sizes = [8, 20], strides = [1, 1]} : vector<8x80xf32> to vector<8x20xf32>
    %134 = arith.negf %133 : vector<8x20xf32>
    %135 = math.exp %134 : vector<8x20xf32>
    %cst_38 = arith.constant 1.000000e+00 : f32
    %136 = vector.broadcast %cst_38 : f32 to vector<8x20xf32>
    %137 = arith.addf %136, %135 : vector<8x20xf32>
    %138 = arith.divf %136, %137 : vector<8x20xf32>
    %139 = vector.extract_strided_slice %126 {offsets = [0, 40], sizes = [8, 20], strides = [1, 1]} : vector<8x80xf32> to vector<8x20xf32>
    %140 = math.tanh %139 : vector<8x20xf32>
    %141 = vector.extract_strided_slice %126 {offsets = [0, 60], sizes = [8, 20], strides = [1, 1]} : vector<8x80xf32> to vector<8x20xf32>
    %142 = arith.negf %141 : vector<8x20xf32>
    %143 = math.exp %142 : vector<8x20xf32>
    %cst_39 = arith.constant 1.000000e+00 : f32
    %144 = vector.broadcast %cst_39 : f32 to vector<8x20xf32>
    %145 = arith.addf %144, %143 : vector<8x20xf32>
    %146 = arith.divf %144, %145 : vector<8x20xf32>
    %147 = arith.mulf %138, %81 : vector<8x20xf32>
    %148 = arith.mulf %132, %140 : vector<8x20xf32>
    %149 = arith.addf %147, %148 : vector<8x20xf32>
    %150 = math.tanh %149 : vector<8x20xf32>
    %151 = arith.mulf %146, %150 : vector<8x20xf32>
    %152 = vector.extract_strided_slice %24 {offsets = [1, 0, 0], sizes = [1, 8, 20], strides = [1, 1, 1]} : vector<8x8x20xf32> to vector<1x8x20xf32>
    %153 = vector.shape_cast %152 : vector<1x8x20xf32> to vector<8x20xf32>
    %cst_40 = arith.constant dense<0.000000e+00> : vector<8x20xf32>
    %154 = tpu.matmul %88, %3, %cst_40 {dimension_numbers = #tpu.dot_dimension_numbers<[1], [0], [0], [1], [0, 0, 1, 1], [], []>} : vector<8x20xf32>, vector<20x20xf32>, vector<8x20xf32> -> vector<8x20xf32>
    %155 = arith.addf %153, %154 : vector<8x20xf32>
    %156 = math.tanh %155 : vector<8x20xf32>
    %157 = tpu.concatenate %156, %93 in 1 : vector<8x20xf32>, vector<8x20xf32> -> vector<8x40xf32>
    %cst_41 = arith.constant dense<0.000000e+00> : vector<8x20xf32>
    %158 = tpu.matmul %157, %4, %cst_41 {dimension_numbers = #tpu.dot_dimension_numbers<[1], [0], [0], [1], [0, 0, 1, 1], [], []>} : vector<8x40xf32>, vector<40x20xf32>, vector<8x20xf32> -> vector<8x20xf32>
    %159 = vector.broadcast %5 : vector<1x20xf32> to vector<8x20xf32>
    %160 = arith.addf %158, %159 : vector<8x20xf32>
    %161 = math.tanh %160 : vector<8x20xf32>
    %162 = vector.extract_strided_slice %15 {offsets = [2, 0, 0], sizes = [1, 8, 80], strides = [1, 1, 1]} : vector<8x8x80xf32> to vector<1x8x80xf32>
    %163 = vector.shape_cast %162 : vector<1x8x80xf32> to vector<8x80xf32>
    %cst_42 = arith.constant dense<0.000000e+00> : vector<8x80xf32>
    %164 = tpu.matmul %122, %0, %cst_42 {dimension_numbers = #tpu.dot_dimension_numbers<[1], [0], [0], [1], [0, 0, 1, 1], [], []>} : vector<8x20xf32>, vector<20x80xf32>, vector<8x80xf32> -> vector<8x80xf32>
    %165 = arith.addf %163, %164 : vector<8x80xf32>
    %166 = vector.extract_strided_slice %165 {offsets = [0, 0], sizes = [8, 20], strides = [1, 1]} : vector<8x80xf32> to vector<8x20xf32>
    %167 = arith.negf %166 : vector<8x20xf32>
    %168 = math.exp %167 : vector<8x20xf32>
    %cst_43 = arith.constant 1.000000e+00 : f32
    %169 = vector.broadcast %cst_43 : f32 to vector<8x20xf32>
    %170 = arith.addf %169, %168 : vector<8x20xf32>
    %171 = arith.divf %169, %170 : vector<8x20xf32>
    %172 = vector.extract_strided_slice %165 {offsets = [0, 20], sizes = [8, 20], strides = [1, 1]} : vector<8x80xf32> to vector<8x20xf32>
    %173 = arith.negf %172 : vector<8x20xf32>
    %174 = math.exp %173 : vector<8x20xf32>
    %cst_44 = arith.constant 1.000000e+00 : f32
    %175 = vector.broadcast %cst_44 : f32 to vector<8x20xf32>
    %176 = arith.addf %175, %174 : vector<8x20xf32>
    %177 = arith.divf %175, %176 : vector<8x20xf32>
    %178 = vector.extract_strided_slice %165 {offsets = [0, 40], sizes = [8, 20], strides = [1, 1]} : vector<8x80xf32> to vector<8x20xf32>
    %179 = math.tanh %178 : vector<8x20xf32>
    %180 = vector.extract_strided_slice %165 {offsets = [0, 60], sizes = [8, 20], strides = [1, 1]} : vector<8x80xf32> to vector<8x20xf32>
    %181 = arith.negf %180 : vector<8x20xf32>
    %182 = math.exp %181 : vector<8x20xf32>
    %cst_45 = arith.constant 1.000000e+00 : f32
    %183 = vector.broadcast %cst_45 : f32 to vector<8x20xf32>
    %184 = arith.addf %183, %182 : vector<8x20xf32>
    %185 = arith.divf %183, %184 : vector<8x20xf32>
    %186 = arith.mulf %177, %120 : vector<8x20xf32>
    %187 = arith.mulf %171, %179 : vector<8x20xf32>
    %188 = arith.addf %186, %187 : vector<8x20xf32>
    %189 = math.tanh %188 : vector<8x20xf32>
    %190 = arith.mulf %185, %189 : vector<8x20xf32>
    %191 = tpu.concatenate %190, %151 in 1 : vector<8x20xf32>, vector<8x20xf32> -> vector<8x40xf32>
    %cst_46 = arith.constant dense<0.000000e+00> : vector<8x80xf32>
    %192 = tpu.matmul %191, %1, %cst_46 {dimension_numbers = #tpu.dot_dimension_numbers<[1], [0], [0], [1], [0, 0, 1, 1], [], []>} : vector<8x40xf32>, vector<40x80xf32>, vector<8x80xf32> -> vector<8x80xf32>
    %193 = vector.broadcast %2 : vector<1x80xf32> to vector<8x80xf32>
    %194 = arith.addf %192, %193 : vector<8x80xf32>
    %195 = vector.extract_strided_slice %194 {offsets = [0, 0], sizes = [8, 20], strides = [1, 1]} : vector<8x80xf32> to vector<8x20xf32>
    %196 = arith.negf %195 : vector<8x20xf32>
    %197 = math.exp %196 : vector<8x20xf32>
    %cst_47 = arith.constant 1.000000e+00 : f32
    %198 = vector.broadcast %cst_47 : f32 to vector<8x20xf32>
    %199 = arith.addf %198, %197 : vector<8x20xf32>
    %200 = arith.divf %198, %199 : vector<8x20xf32>
    %201 = vector.extract_strided_slice %194 {offsets = [0, 20], sizes = [8, 20], strides = [1, 1]} : vector<8x80xf32> to vector<8x20xf32>
    %202 = arith.negf %201 : vector<8x20xf32>
    %203 = math.exp %202 : vector<8x20xf32>
    %cst_48 = arith.constant 1.000000e+00 : f32
    %204 = vector.broadcast %cst_48 : f32 to vector<8x20xf32>
    %205 = arith.addf %204, %203 : vector<8x20xf32>
    %206 = arith.divf %204, %205 : vector<8x20xf32>
    %207 = vector.extract_strided_slice %194 {offsets = [0, 40], sizes = [8, 20], strides = [1, 1]} : vector<8x80xf32> to vector<8x20xf32>
    %208 = math.tanh %207 : vector<8x20xf32>
    %209 = vector.extract_strided_slice %194 {offsets = [0, 60], sizes = [8, 20], strides = [1, 1]} : vector<8x80xf32> to vector<8x20xf32>
    %210 = arith.negf %209 : vector<8x20xf32>
    %211 = math.exp %210 : vector<8x20xf32>
    %cst_49 = arith.constant 1.000000e+00 : f32
    %212 = vector.broadcast %cst_49 : f32 to vector<8x20xf32>
    %213 = arith.addf %212, %211 : vector<8x20xf32>
    %214 = arith.divf %212, %213 : vector<8x20xf32>
    %215 = arith.mulf %206, %149 : vector<8x20xf32>
    %216 = arith.mulf %200, %208 : vector<8x20xf32>
    %217 = arith.addf %215, %216 : vector<8x20xf32>
    %218 = math.tanh %217 : vector<8x20xf32>
    %219 = arith.mulf %214, %218 : vector<8x20xf32>
    %220 = vector.extract_strided_slice %24 {offsets = [2, 0, 0], sizes = [1, 8, 20], strides = [1, 1, 1]} : vector<8x8x20xf32> to vector<1x8x20xf32>
    %221 = vector.shape_cast %220 : vector<1x8x20xf32> to vector<8x20xf32>
    %cst_50 = arith.constant dense<0.000000e+00> : vector<8x20xf32>
    %222 = tpu.matmul %156, %3, %cst_50 {dimension_numbers = #tpu.dot_dimension_numbers<[1], [0], [0], [1], [0, 0, 1, 1], [], []>} : vector<8x20xf32>, vector<20x20xf32>, vector<8x20xf32> -> vector<8x20xf32>
    %223 = arith.addf %221, %222 : vector<8x20xf32>
    %224 = math.tanh %223 : vector<8x20xf32>
    %225 = tpu.concatenate %224, %161 in 1 : vector<8x20xf32>, vector<8x20xf32> -> vector<8x40xf32>
    %cst_51 = arith.constant dense<0.000000e+00> : vector<8x20xf32>
    %226 = tpu.matmul %225, %4, %cst_51 {dimension_numbers = #tpu.dot_dimension_numbers<[1], [0], [0], [1], [0, 0, 1, 1], [], []>} : vector<8x40xf32>, vector<40x20xf32>, vector<8x20xf32> -> vector<8x20xf32>
    %227 = vector.broadcast %5 : vector<1x20xf32> to vector<8x20xf32>
    %228 = arith.addf %226, %227 : vector<8x20xf32>
    %229 = math.tanh %228 : vector<8x20xf32>
    %230 = vector.extract_strided_slice %15 {offsets = [3, 0, 0], sizes = [1, 8, 80], strides = [1, 1, 1]} : vector<8x8x80xf32> to vector<1x8x80xf32>
    %231 = vector.shape_cast %230 : vector<1x8x80xf32> to vector<8x80xf32>
    %cst_52 = arith.constant dense<0.000000e+00> : vector<8x80xf32>
    %232 = tpu.matmul %190, %0, %cst_52 {dimension_numbers = #tpu.dot_dimension_numbers<[1], [0], [0], [1], [0, 0, 1, 1], [], []>} : vector<8x20xf32>, vector<20x80xf32>, vector<8x80xf32> -> vector<8x80xf32>
    %233 = arith.addf %231, %232 : vector<8x80xf32>
    %234 = vector.extract_strided_slice %233 {offsets = [0, 0], sizes = [8, 20], strides = [1, 1]} : vector<8x80xf32> to vector<8x20xf32>
    %235 = arith.negf %234 : vector<8x20xf32>
    %236 = math.exp %235 : vector<8x20xf32>
    %cst_53 = arith.constant 1.000000e+00 : f32
    %237 = vector.broadcast %cst_53 : f32 to vector<8x20xf32>
    %238 = arith.addf %237, %236 : vector<8x20xf32>
    %239 = arith.divf %237, %238 : vector<8x20xf32>
    %240 = vector.extract_strided_slice %233 {offsets = [0, 20], sizes = [8, 20], strides = [1, 1]} : vector<8x80xf32> to vector<8x20xf32>
    %241 = arith.negf %240 : vector<8x20xf32>
    %242 = math.exp %241 : vector<8x20xf32>
    %cst_54 = arith.constant 1.000000e+00 : f32
    %243 = vector.broadcast %cst_54 : f32 to vector<8x20xf32>
    %244 = arith.addf %243, %242 : vector<8x20xf32>
    %245 = arith.divf %243, %244 : vector<8x20xf32>
    %246 = vector.extract_strided_slice %233 {offsets = [0, 40], sizes = [8, 20], strides = [1, 1]} : vector<8x80xf32> to vector<8x20xf32>
    %247 = math.tanh %246 : vector<8x20xf32>
    %248 = vector.extract_strided_slice %233 {offsets = [0, 60], sizes = [8, 20], strides = [1, 1]} : vector<8x80xf32> to vector<8x20xf32>
    %249 = arith.negf %248 : vector<8x20xf32>
    %250 = math.exp %249 : vector<8x20xf32>
    %cst_55 = arith.constant 1.000000e+00 : f32
    %251 = vector.broadcast %cst_55 : f32 to vector<8x20xf32>
    %252 = arith.addf %251, %250 : vector<8x20xf32>
    %253 = arith.divf %251, %252 : vector<8x20xf32>
    %254 = arith.mulf %245, %188 : vector<8x20xf32>
    %255 = arith.mulf %239, %247 : vector<8x20xf32>
    %256 = arith.addf %254, %255 : vector<8x20xf32>
    %257 = math.tanh %256 : vector<8x20xf32>
    %258 = arith.mulf %253, %257 : vector<8x20xf32>
    %259 = tpu.concatenate %258, %219 in 1 : vector<8x20xf32>, vector<8x20xf32> -> vector<8x40xf32>
    %cst_56 = arith.constant dense<0.000000e+00> : vector<8x80xf32>
    %260 = tpu.matmul %259, %1, %cst_56 {dimension_numbers = #tpu.dot_dimension_numbers<[1], [0], [0], [1], [0, 0, 1, 1], [], []>} : vector<8x40xf32>, vector<40x80xf32>, vector<8x80xf32> -> vector<8x80xf32>
    %261 = vector.broadcast %2 : vector<1x80xf32> to vector<8x80xf32>
    %262 = arith.addf %260, %261 : vector<8x80xf32>
    %263 = vector.extract_strided_slice %262 {offsets = [0, 0], sizes = [8, 20], strides = [1, 1]} : vector<8x80xf32> to vector<8x20xf32>
    %264 = arith.negf %263 : vector<8x20xf32>
    %265 = math.exp %264 : vector<8x20xf32>
    %cst_57 = arith.constant 1.000000e+00 : f32
    %266 = vector.broadcast %cst_57 : f32 to vector<8x20xf32>
    %267 = arith.addf %266, %265 : vector<8x20xf32>
    %268 = arith.divf %266, %267 : vector<8x20xf32>
    %269 = vector.extract_strided_slice %262 {offsets = [0, 20], sizes = [8, 20], strides = [1, 1]} : vector<8x80xf32> to vector<8x20xf32>
    %270 = arith.negf %269 : vector<8x20xf32>
    %271 = math.exp %270 : vector<8x20xf32>
    %cst_58 = arith.constant 1.000000e+00 : f32
    %272 = vector.broadcast %cst_58 : f32 to vector<8x20xf32>
    %273 = arith.addf %272, %271 : vector<8x20xf32>
    %274 = arith.divf %272, %273 : vector<8x20xf32>
    %275 = vector.extract_strided_slice %262 {offsets = [0, 40], sizes = [8, 20], strides = [1, 1]} : vector<8x80xf32> to vector<8x20xf32>
    %276 = math.tanh %275 : vector<8x20xf32>
    %277 = vector.extract_strided_slice %262 {offsets = [0, 60], sizes = [8, 20], strides = [1, 1]} : vector<8x80xf32> to vector<8x20xf32>
    %278 = arith.negf %277 : vector<8x20xf32>
    %279 = math.exp %278 : vector<8x20xf32>
    %cst_59 = arith.constant 1.000000e+00 : f32
    %280 = vector.broadcast %cst_59 : f32 to vector<8x20xf32>
    %281 = arith.addf %280, %279 : vector<8x20xf32>
    %282 = arith.divf %280, %281 : vector<8x20xf32>
    %283 = arith.mulf %274, %217 : vector<8x20xf32>
    %284 = arith.mulf %268, %276 : vector<8x20xf32>
    %285 = arith.addf %283, %284 : vector<8x20xf32>
    %286 = math.tanh %285 : vector<8x20xf32>
    %287 = arith.mulf %282, %286 : vector<8x20xf32>
    %288 = vector.extract_strided_slice %24 {offsets = [3, 0, 0], sizes = [1, 8, 20], strides = [1, 1, 1]} : vector<8x8x20xf32> to vector<1x8x20xf32>
    %289 = vector.shape_cast %288 : vector<1x8x20xf32> to vector<8x20xf32>
    %cst_60 = arith.constant dense<0.000000e+00> : vector<8x20xf32>
    %290 = tpu.matmul %224, %3, %cst_60 {dimension_numbers = #tpu.dot_dimension_numbers<[1], [0], [0], [1], [0, 0, 1, 1], [], []>} : vector<8x20xf32>, vector<20x20xf32>, vector<8x20xf32> -> vector<8x20xf32>
    %291 = arith.addf %289, %290 : vector<8x20xf32>
    %292 = math.tanh %291 : vector<8x20xf32>
    %293 = tpu.concatenate %292, %229 in 1 : vector<8x20xf32>, vector<8x20xf32> -> vector<8x40xf32>
    %cst_61 = arith.constant dense<0.000000e+00> : vector<8x20xf32>
    %294 = tpu.matmul %293, %4, %cst_61 {dimension_numbers = #tpu.dot_dimension_numbers<[1], [0], [0], [1], [0, 0, 1, 1], [], []>} : vector<8x40xf32>, vector<40x20xf32>, vector<8x20xf32> -> vector<8x20xf32>
    %295 = vector.broadcast %5 : vector<1x20xf32> to vector<8x20xf32>
    %296 = arith.addf %294, %295 : vector<8x20xf32>
    %297 = math.tanh %296 : vector<8x20xf32>
    %298 = vector.extract_strided_slice %15 {offsets = [4, 0, 0], sizes = [1, 8, 80], strides = [1, 1, 1]} : vector<8x8x80xf32> to vector<1x8x80xf32>
    %299 = vector.shape_cast %298 : vector<1x8x80xf32> to vector<8x80xf32>
    %cst_62 = arith.constant dense<0.000000e+00> : vector<8x80xf32>
    %300 = tpu.matmul %258, %0, %cst_62 {dimension_numbers = #tpu.dot_dimension_numbers<[1], [0], [0], [1], [0, 0, 1, 1], [], []>} : vector<8x20xf32>, vector<20x80xf32>, vector<8x80xf32> -> vector<8x80xf32>
    %301 = arith.addf %299, %300 : vector<8x80xf32>
    %302 = vector.extract_strided_slice %301 {offsets = [0, 0], sizes = [8, 20], strides = [1, 1]} : vector<8x80xf32> to vector<8x20xf32>
    %303 = arith.negf %302 : vector<8x20xf32>
    %304 = math.exp %303 : vector<8x20xf32>
    %cst_63 = arith.constant 1.000000e+00 : f32
    %305 = vector.broadcast %cst_63 : f32 to vector<8x20xf32>
    %306 = arith.addf %305, %304 : vector<8x20xf32>
    %307 = arith.divf %305, %306 : vector<8x20xf32>
    %308 = vector.extract_strided_slice %301 {offsets = [0, 20], sizes = [8, 20], strides = [1, 1]} : vector<8x80xf32> to vector<8x20xf32>
    %309 = arith.negf %308 : vector<8x20xf32>
    %310 = math.exp %309 : vector<8x20xf32>
    %cst_64 = arith.constant 1.000000e+00 : f32
    %311 = vector.broadcast %cst_64 : f32 to vector<8x20xf32>
    %312 = arith.addf %311, %310 : vector<8x20xf32>
    %313 = arith.divf %311, %312 : vector<8x20xf32>
    %314 = vector.extract_strided_slice %301 {offsets = [0, 40], sizes = [8, 20], strides = [1, 1]} : vector<8x80xf32> to vector<8x20xf32>
    %315 = math.tanh %314 : vector<8x20xf32>
    %316 = vector.extract_strided_slice %301 {offsets = [0, 60], sizes = [8, 20], strides = [1, 1]} : vector<8x80xf32> to vector<8x20xf32>
    %317 = arith.negf %316 : vector<8x20xf32>
    %318 = math.exp %317 : vector<8x20xf32>
    %cst_65 = arith.constant 1.000000e+00 : f32
    %319 = vector.broadcast %cst_65 : f32 to vector<8x20xf32>
    %320 = arith.addf %319, %318 : vector<8x20xf32>
    %321 = arith.divf %319, %320 : vector<8x20xf32>
    %322 = arith.mulf %313, %256 : vector<8x20xf32>
    %323 = arith.mulf %307, %315 : vector<8x20xf32>
    %324 = arith.addf %322, %323 : vector<8x20xf32>
    %325 = math.tanh %324 : vector<8x20xf32>
    %326 = arith.mulf %321, %325 : vector<8x20xf32>
    %327 = tpu.concatenate %326, %287 in 1 : vector<8x20xf32>, vector<8x20xf32> -> vector<8x40xf32>
    %cst_66 = arith.constant dense<0.000000e+00> : vector<8x80xf32>
    %328 = tpu.matmul %327, %1, %cst_66 {dimension_numbers = #tpu.dot_dimension_numbers<[1], [0], [0], [1], [0, 0, 1, 1], [], []>} : vector<8x40xf32>, vector<40x80xf32>, vector<8x80xf32> -> vector<8x80xf32>
    %329 = vector.broadcast %2 : vector<1x80xf32> to vector<8x80xf32>
    %330 = arith.addf %328, %329 : vector<8x80xf32>
    %331 = vector.extract_strided_slice %330 {offsets = [0, 0], sizes = [8, 20], strides = [1, 1]} : vector<8x80xf32> to vector<8x20xf32>
    %332 = arith.negf %331 : vector<8x20xf32>
    %333 = math.exp %332 : vector<8x20xf32>
    %cst_67 = arith.constant 1.000000e+00 : f32
    %334 = vector.broadcast %cst_67 : f32 to vector<8x20xf32>
    %335 = arith.addf %334, %333 : vector<8x20xf32>
    %336 = arith.divf %334, %335 : vector<8x20xf32>
    %337 = vector.extract_strided_slice %330 {offsets = [0, 20], sizes = [8, 20], strides = [1, 1]} : vector<8x80xf32> to vector<8x20xf32>
    %338 = arith.negf %337 : vector<8x20xf32>
    %339 = math.exp %338 : vector<8x20xf32>
    %cst_68 = arith.constant 1.000000e+00 : f32
    %340 = vector.broadcast %cst_68 : f32 to vector<8x20xf32>
    %341 = arith.addf %340, %339 : vector<8x20xf32>
    %342 = arith.divf %340, %341 : vector<8x20xf32>
    %343 = vector.extract_strided_slice %330 {offsets = [0, 40], sizes = [8, 20], strides = [1, 1]} : vector<8x80xf32> to vector<8x20xf32>
    %344 = math.tanh %343 : vector<8x20xf32>
    %345 = vector.extract_strided_slice %330 {offsets = [0, 60], sizes = [8, 20], strides = [1, 1]} : vector<8x80xf32> to vector<8x20xf32>
    %346 = arith.negf %345 : vector<8x20xf32>
    %347 = math.exp %346 : vector<8x20xf32>
    %cst_69 = arith.constant 1.000000e+00 : f32
    %348 = vector.broadcast %cst_69 : f32 to vector<8x20xf32>
    %349 = arith.addf %348, %347 : vector<8x20xf32>
    %350 = arith.divf %348, %349 : vector<8x20xf32>
    %351 = arith.mulf %342, %285 : vector<8x20xf32>
    %352 = arith.mulf %336, %344 : vector<8x20xf32>
    %353 = arith.addf %351, %352 : vector<8x20xf32>
    %354 = math.tanh %353 : vector<8x20xf32>
    %355 = arith.mulf %350, %354 : vector<8x20xf32>
    %356 = vector.extract_strided_slice %24 {offsets = [4, 0, 0], sizes = [1, 8, 20], strides = [1, 1, 1]} : vector<8x8x20xf32> to vector<1x8x20xf32>
    %357 = vector.shape_cast %356 : vector<1x8x20xf32> to vector<8x20xf32>
    %cst_70 = arith.constant dense<0.000000e+00> : vector<8x20xf32>
    %358 = tpu.matmul %292, %3, %cst_70 {dimension_numbers = #tpu.dot_dimension_numbers<[1], [0], [0], [1], [0, 0, 1, 1], [], []>} : vector<8x20xf32>, vector<20x20xf32>, vector<8x20xf32> -> vector<8x20xf32>
    %359 = arith.addf %357, %358 : vector<8x20xf32>
    %360 = math.tanh %359 : vector<8x20xf32>
    %361 = tpu.concatenate %360, %297 in 1 : vector<8x20xf32>, vector<8x20xf32> -> vector<8x40xf32>
    %cst_71 = arith.constant dense<0.000000e+00> : vector<8x20xf32>
    %362 = tpu.matmul %361, %4, %cst_71 {dimension_numbers = #tpu.dot_dimension_numbers<[1], [0], [0], [1], [0, 0, 1, 1], [], []>} : vector<8x40xf32>, vector<40x20xf32>, vector<8x20xf32> -> vector<8x20xf32>
    %363 = vector.broadcast %5 : vector<1x20xf32> to vector<8x20xf32>
    %364 = arith.addf %362, %363 : vector<8x20xf32>
    %365 = math.tanh %364 : vector<8x20xf32>
    %366 = vector.extract_strided_slice %15 {offsets = [5, 0, 0], sizes = [1, 8, 80], strides = [1, 1, 1]} : vector<8x8x80xf32> to vector<1x8x80xf32>
    %367 = vector.shape_cast %366 : vector<1x8x80xf32> to vector<8x80xf32>
    %cst_72 = arith.constant dense<0.000000e+00> : vector<8x80xf32>
    %368 = tpu.matmul %326, %0, %cst_72 {dimension_numbers = #tpu.dot_dimension_numbers<[1], [0], [0], [1], [0, 0, 1, 1], [], []>} : vector<8x20xf32>, vector<20x80xf32>, vector<8x80xf32> -> vector<8x80xf32>
    %369 = arith.addf %367, %368 : vector<8x80xf32>
    %370 = vector.extract_strided_slice %369 {offsets = [0, 0], sizes = [8, 20], strides = [1, 1]} : vector<8x80xf32> to vector<8x20xf32>
    %371 = arith.negf %370 : vector<8x20xf32>
    %372 = math.exp %371 : vector<8x20xf32>
    %cst_73 = arith.constant 1.000000e+00 : f32
    %373 = vector.broadcast %cst_73 : f32 to vector<8x20xf32>
    %374 = arith.addf %373, %372 : vector<8x20xf32>
    %375 = arith.divf %373, %374 : vector<8x20xf32>
    %376 = vector.extract_strided_slice %369 {offsets = [0, 20], sizes = [8, 20], strides = [1, 1]} : vector<8x80xf32> to vector<8x20xf32>
    %377 = arith.negf %376 : vector<8x20xf32>
    %378 = math.exp %377 : vector<8x20xf32>
    %cst_74 = arith.constant 1.000000e+00 : f32
    %379 = vector.broadcast %cst_74 : f32 to vector<8x20xf32>
    %380 = arith.addf %379, %378 : vector<8x20xf32>
    %381 = arith.divf %379, %380 : vector<8x20xf32>
    %382 = vector.extract_strided_slice %369 {offsets = [0, 40], sizes = [8, 20], strides = [1, 1]} : vector<8x80xf32> to vector<8x20xf32>
    %383 = math.tanh %382 : vector<8x20xf32>
    %384 = vector.extract_strided_slice %369 {offsets = [0, 60], sizes = [8, 20], strides = [1, 1]} : vector<8x80xf32> to vector<8x20xf32>
    %385 = arith.negf %384 : vector<8x20xf32>
    %386 = math.exp %385 : vector<8x20xf32>
    %cst_75 = arith.constant 1.000000e+00 : f32
    %387 = vector.broadcast %cst_75 : f32 to vector<8x20xf32>
    %388 = arith.addf %387, %386 : vector<8x20xf32>
    %389 = arith.divf %387, %388 : vector<8x20xf32>
    %390 = arith.mulf %381, %324 : vector<8x20xf32>
    %391 = arith.mulf %375, %383 : vector<8x20xf32>
    %392 = arith.addf %390, %391 : vector<8x20xf32>
    %393 = math.tanh %392 : vector<8x20xf32>
    %394 = arith.mulf %389, %393 : vector<8x20xf32>
    %395 = tpu.concatenate %394, %355 in 1 : vector<8x20xf32>, vector<8x20xf32> -> vector<8x40xf32>
    %cst_76 = arith.constant dense<0.000000e+00> : vector<8x80xf32>
    %396 = tpu.matmul %395, %1, %cst_76 {dimension_numbers = #tpu.dot_dimension_numbers<[1], [0], [0], [1], [0, 0, 1, 1], [], []>} : vector<8x40xf32>, vector<40x80xf32>, vector<8x80xf32> -> vector<8x80xf32>
    %397 = vector.broadcast %2 : vector<1x80xf32> to vector<8x80xf32>
    %398 = arith.addf %396, %397 : vector<8x80xf32>
    %399 = vector.extract_strided_slice %398 {offsets = [0, 0], sizes = [8, 20], strides = [1, 1]} : vector<8x80xf32> to vector<8x20xf32>
    %400 = arith.negf %399 : vector<8x20xf32>
    %401 = math.exp %400 : vector<8x20xf32>
    %cst_77 = arith.constant 1.000000e+00 : f32
    %402 = vector.broadcast %cst_77 : f32 to vector<8x20xf32>
    %403 = arith.addf %402, %401 : vector<8x20xf32>
    %404 = arith.divf %402, %403 : vector<8x20xf32>
    %405 = vector.extract_strided_slice %398 {offsets = [0, 20], sizes = [8, 20], strides = [1, 1]} : vector<8x80xf32> to vector<8x20xf32>
    %406 = arith.negf %405 : vector<8x20xf32>
    %407 = math.exp %406 : vector<8x20xf32>
    %cst_78 = arith.constant 1.000000e+00 : f32
    %408 = vector.broadcast %cst_78 : f32 to vector<8x20xf32>
    %409 = arith.addf %408, %407 : vector<8x20xf32>
    %410 = arith.divf %408, %409 : vector<8x20xf32>
    %411 = vector.extract_strided_slice %398 {offsets = [0, 40], sizes = [8, 20], strides = [1, 1]} : vector<8x80xf32> to vector<8x20xf32>
    %412 = math.tanh %411 : vector<8x20xf32>
    %413 = vector.extract_strided_slice %398 {offsets = [0, 60], sizes = [8, 20], strides = [1, 1]} : vector<8x80xf32> to vector<8x20xf32>
    %414 = arith.negf %413 : vector<8x20xf32>
    %415 = math.exp %414 : vector<8x20xf32>
    %cst_79 = arith.constant 1.000000e+00 : f32
    %416 = vector.broadcast %cst_79 : f32 to vector<8x20xf32>
    %417 = arith.addf %416, %415 : vector<8x20xf32>
    %418 = arith.divf %416, %417 : vector<8x20xf32>
    %419 = arith.mulf %410, %353 : vector<8x20xf32>
    %420 = arith.mulf %404, %412 : vector<8x20xf32>
    %421 = arith.addf %419, %420 : vector<8x20xf32>
    %422 = math.tanh %421 : vector<8x20xf32>
    %423 = arith.mulf %418, %422 : vector<8x20xf32>
    %424 = vector.extract_strided_slice %24 {offsets = [5, 0, 0], sizes = [1, 8, 20], strides = [1, 1, 1]} : vector<8x8x20xf32> to vector<1x8x20xf32>
    %425 = vector.shape_cast %424 : vector<1x8x20xf32> to vector<8x20xf32>
    %cst_80 = arith.constant dense<0.000000e+00> : vector<8x20xf32>
    %426 = tpu.matmul %360, %3, %cst_80 {dimension_numbers = #tpu.dot_dimension_numbers<[1], [0], [0], [1], [0, 0, 1, 1], [], []>} : vector<8x20xf32>, vector<20x20xf32>, vector<8x20xf32> -> vector<8x20xf32>
    %427 = arith.addf %425, %426 : vector<8x20xf32>
    %428 = math.tanh %427 : vector<8x20xf32>
    %429 = tpu.concatenate %428, %365 in 1 : vector<8x20xf32>, vector<8x20xf32> -> vector<8x40xf32>
    %cst_81 = arith.constant dense<0.000000e+00> : vector<8x20xf32>
    %430 = tpu.matmul %429, %4, %cst_81 {dimension_numbers = #tpu.dot_dimension_numbers<[1], [0], [0], [1], [0, 0, 1, 1], [], []>} : vector<8x40xf32>, vector<40x20xf32>, vector<8x20xf32> -> vector<8x20xf32>
    %431 = vector.broadcast %5 : vector<1x20xf32> to vector<8x20xf32>
    %432 = arith.addf %430, %431 : vector<8x20xf32>
    %433 = math.tanh %432 : vector<8x20xf32>
    %434 = vector.extract_strided_slice %15 {offsets = [6, 0, 0], sizes = [1, 8, 80], strides = [1, 1, 1]} : vector<8x8x80xf32> to vector<1x8x80xf32>
    %435 = vector.shape_cast %434 : vector<1x8x80xf32> to vector<8x80xf32>
    %cst_82 = arith.constant dense<0.000000e+00> : vector<8x80xf32>
    %436 = tpu.matmul %394, %0, %cst_82 {dimension_numbers = #tpu.dot_dimension_numbers<[1], [0], [0], [1], [0, 0, 1, 1], [], []>} : vector<8x20xf32>, vector<20x80xf32>, vector<8x80xf32> -> vector<8x80xf32>
    %437 = arith.addf %435, %436 : vector<8x80xf32>
    %438 = vector.extract_strided_slice %437 {offsets = [0, 0], sizes = [8, 20], strides = [1, 1]} : vector<8x80xf32> to vector<8x20xf32>
    %439 = arith.negf %438 : vector<8x20xf32>
    %440 = math.exp %439 : vector<8x20xf32>
    %cst_83 = arith.constant 1.000000e+00 : f32
    %441 = vector.broadcast %cst_83 : f32 to vector<8x20xf32>
    %442 = arith.addf %441, %440 : vector<8x20xf32>
    %443 = arith.divf %441, %442 : vector<8x20xf32>
    %444 = vector.extract_strided_slice %437 {offsets = [0, 20], sizes = [8, 20], strides = [1, 1]} : vector<8x80xf32> to vector<8x20xf32>
    %445 = arith.negf %444 : vector<8x20xf32>
    %446 = math.exp %445 : vector<8x20xf32>
    %cst_84 = arith.constant 1.000000e+00 : f32
    %447 = vector.broadcast %cst_84 : f32 to vector<8x20xf32>
    %448 = arith.addf %447, %446 : vector<8x20xf32>
    %449 = arith.divf %447, %448 : vector<8x20xf32>
    %450 = vector.extract_strided_slice %437 {offsets = [0, 40], sizes = [8, 20], strides = [1, 1]} : vector<8x80xf32> to vector<8x20xf32>
    %451 = math.tanh %450 : vector<8x20xf32>
    %452 = vector.extract_strided_slice %437 {offsets = [0, 60], sizes = [8, 20], strides = [1, 1]} : vector<8x80xf32> to vector<8x20xf32>
    %453 = arith.negf %452 : vector<8x20xf32>
    %454 = math.exp %453 : vector<8x20xf32>
    %cst_85 = arith.constant 1.000000e+00 : f32
    %455 = vector.broadcast %cst_85 : f32 to vector<8x20xf32>
    %456 = arith.addf %455, %454 : vector<8x20xf32>
    %457 = arith.divf %455, %456 : vector<8x20xf32>
    %458 = arith.mulf %449, %392 : vector<8x20xf32>
    %459 = arith.mulf %443, %451 : vector<8x20xf32>
    %460 = arith.addf %458, %459 : vector<8x20xf32>
    %461 = math.tanh %460 : vector<8x20xf32>
    %462 = arith.mulf %457, %461 : vector<8x20xf32>
    %463 = tpu.concatenate %462, %423 in 1 : vector<8x20xf32>, vector<8x20xf32> -> vector<8x40xf32>
    %cst_86 = arith.constant dense<0.000000e+00> : vector<8x80xf32>
    %464 = tpu.matmul %463, %1, %cst_86 {dimension_numbers = #tpu.dot_dimension_numbers<[1], [0], [0], [1], [0, 0, 1, 1], [], []>} : vector<8x40xf32>, vector<40x80xf32>, vector<8x80xf32> -> vector<8x80xf32>
    %465 = vector.broadcast %2 : vector<1x80xf32> to vector<8x80xf32>
    %466 = arith.addf %464, %465 : vector<8x80xf32>
    %467 = vector.extract_strided_slice %466 {offsets = [0, 0], sizes = [8, 20], strides = [1, 1]} : vector<8x80xf32> to vector<8x20xf32>
    %468 = arith.negf %467 : vector<8x20xf32>
    %469 = math.exp %468 : vector<8x20xf32>
    %cst_87 = arith.constant 1.000000e+00 : f32
    %470 = vector.broadcast %cst_87 : f32 to vector<8x20xf32>
    %471 = arith.addf %470, %469 : vector<8x20xf32>
    %472 = arith.divf %470, %471 : vector<8x20xf32>
    %473 = vector.extract_strided_slice %466 {offsets = [0, 20], sizes = [8, 20], strides = [1, 1]} : vector<8x80xf32> to vector<8x20xf32>
    %474 = arith.negf %473 : vector<8x20xf32>
    %475 = math.exp %474 : vector<8x20xf32>
    %cst_88 = arith.constant 1.000000e+00 : f32
    %476 = vector.broadcast %cst_88 : f32 to vector<8x20xf32>
    %477 = arith.addf %476, %475 : vector<8x20xf32>
    %478 = arith.divf %476, %477 : vector<8x20xf32>
    %479 = vector.extract_strided_slice %466 {offsets = [0, 40], sizes = [8, 20], strides = [1, 1]} : vector<8x80xf32> to vector<8x20xf32>
    %480 = math.tanh %479 : vector<8x20xf32>
    %481 = vector.extract_strided_slice %466 {offsets = [0, 60], sizes = [8, 20], strides = [1, 1]} : vector<8x80xf32> to vector<8x20xf32>
    %482 = arith.negf %481 : vector<8x20xf32>
    %483 = math.exp %482 : vector<8x20xf32>
    %cst_89 = arith.constant 1.000000e+00 : f32
    %484 = vector.broadcast %cst_89 : f32 to vector<8x20xf32>
    %485 = arith.addf %484, %483 : vector<8x20xf32>
    %486 = arith.divf %484, %485 : vector<8x20xf32>
    %487 = arith.mulf %478, %421 : vector<8x20xf32>
    %488 = arith.mulf %472, %480 : vector<8x20xf32>
    %489 = arith.addf %487, %488 : vector<8x20xf32>
    %490 = math.tanh %489 : vector<8x20xf32>
    %491 = arith.mulf %486, %490 : vector<8x20xf32>
    %492 = vector.extract_strided_slice %24 {offsets = [6, 0, 0], sizes = [1, 8, 20], strides = [1, 1, 1]} : vector<8x8x20xf32> to vector<1x8x20xf32>
    %493 = vector.shape_cast %492 : vector<1x8x20xf32> to vector<8x20xf32>
    %cst_90 = arith.constant dense<0.000000e+00> : vector<8x20xf32>
    %494 = tpu.matmul %428, %3, %cst_90 {dimension_numbers = #tpu.dot_dimension_numbers<[1], [0], [0], [1], [0, 0, 1, 1], [], []>} : vector<8x20xf32>, vector<20x20xf32>, vector<8x20xf32> -> vector<8x20xf32>
    %495 = arith.addf %493, %494 : vector<8x20xf32>
    %496 = math.tanh %495 : vector<8x20xf32>
    %497 = tpu.concatenate %496, %433 in 1 : vector<8x20xf32>, vector<8x20xf32> -> vector<8x40xf32>
    %cst_91 = arith.constant dense<0.000000e+00> : vector<8x20xf32>
    %498 = tpu.matmul %497, %4, %cst_91 {dimension_numbers = #tpu.dot_dimension_numbers<[1], [0], [0], [1], [0, 0, 1, 1], [], []>} : vector<8x40xf32>, vector<40x20xf32>, vector<8x20xf32> -> vector<8x20xf32>
    %499 = vector.broadcast %5 : vector<1x20xf32> to vector<8x20xf32>
    %500 = arith.addf %498, %499 : vector<8x20xf32>
    %501 = math.tanh %500 : vector<8x20xf32>
    %502 = vector.extract_strided_slice %15 {offsets = [7, 0, 0], sizes = [1, 8, 80], strides = [1, 1, 1]} : vector<8x8x80xf32> to vector<1x8x80xf32>
    %503 = vector.shape_cast %502 : vector<1x8x80xf32> to vector<8x80xf32>
    %cst_92 = arith.constant dense<0.000000e+00> : vector<8x80xf32>
    %504 = tpu.matmul %462, %0, %cst_92 {dimension_numbers = #tpu.dot_dimension_numbers<[1], [0], [0], [1], [0, 0, 1, 1], [], []>} : vector<8x20xf32>, vector<20x80xf32>, vector<8x80xf32> -> vector<8x80xf32>
    %505 = arith.addf %503, %504 : vector<8x80xf32>
    %506 = vector.extract_strided_slice %505 {offsets = [0, 0], sizes = [8, 20], strides = [1, 1]} : vector<8x80xf32> to vector<8x20xf32>
    %507 = arith.negf %506 : vector<8x20xf32>
    %508 = math.exp %507 : vector<8x20xf32>
    %cst_93 = arith.constant 1.000000e+00 : f32
    %509 = vector.broadcast %cst_93 : f32 to vector<8x20xf32>
    %510 = arith.addf %509, %508 : vector<8x20xf32>
    %511 = arith.divf %509, %510 : vector<8x20xf32>
    %512 = vector.extract_strided_slice %505 {offsets = [0, 20], sizes = [8, 20], strides = [1, 1]} : vector<8x80xf32> to vector<8x20xf32>
    %513 = arith.negf %512 : vector<8x20xf32>
    %514 = math.exp %513 : vector<8x20xf32>
    %cst_94 = arith.constant 1.000000e+00 : f32
    %515 = vector.broadcast %cst_94 : f32 to vector<8x20xf32>
    %516 = arith.addf %515, %514 : vector<8x20xf32>
    %517 = arith.divf %515, %516 : vector<8x20xf32>
    %518 = vector.extract_strided_slice %505 {offsets = [0, 40], sizes = [8, 20], strides = [1, 1]} : vector<8x80xf32> to vector<8x20xf32>
    %519 = math.tanh %518 : vector<8x20xf32>
    %520 = vector.extract_strided_slice %505 {offsets = [0, 60], sizes = [8, 20], strides = [1, 1]} : vector<8x80xf32> to vector<8x20xf32>
    %521 = arith.negf %520 : vector<8x20xf32>
    %522 = math.exp %521 : vector<8x20xf32>
    %cst_95 = arith.constant 1.000000e+00 : f32
    %523 = vector.broadcast %cst_95 : f32 to vector<8x20xf32>
    %524 = arith.addf %523, %522 : vector<8x20xf32>
    %525 = arith.divf %523, %524 : vector<8x20xf32>
    %526 = arith.mulf %517, %460 : vector<8x20xf32>
    %527 = arith.mulf %511, %519 : vector<8x20xf32>
    %528 = arith.addf %526, %527 : vector<8x20xf32>
    %529 = math.tanh %528 : vector<8x20xf32>
    %530 = arith.mulf %525, %529 : vector<8x20xf32>
    %531 = tpu.concatenate %530, %491 in 1 : vector<8x20xf32>, vector<8x20xf32> -> vector<8x40xf32>
    %cst_96 = arith.constant dense<0.000000e+00> : vector<8x80xf32>
    %532 = tpu.matmul %531, %1, %cst_96 {dimension_numbers = #tpu.dot_dimension_numbers<[1], [0], [0], [1], [0, 0, 1, 1], [], []>} : vector<8x40xf32>, vector<40x80xf32>, vector<8x80xf32> -> vector<8x80xf32>
    %533 = vector.broadcast %2 : vector<1x80xf32> to vector<8x80xf32>
    %534 = arith.addf %532, %533 : vector<8x80xf32>
    %535 = vector.extract_strided_slice %534 {offsets = [0, 0], sizes = [8, 20], strides = [1, 1]} : vector<8x80xf32> to vector<8x20xf32>
    %536 = arith.negf %535 : vector<8x20xf32>
    %537 = math.exp %536 : vector<8x20xf32>
    %cst_97 = arith.constant 1.000000e+00 : f32
    %538 = vector.broadcast %cst_97 : f32 to vector<8x20xf32>
    %539 = arith.addf %538, %537 : vector<8x20xf32>
    %540 = arith.divf %538, %539 : vector<8x20xf32>
    %541 = vector.extract_strided_slice %534 {offsets = [0, 20], sizes = [8, 20], strides = [1, 1]} : vector<8x80xf32> to vector<8x20xf32>
    %542 = arith.negf %541 : vector<8x20xf32>
    %543 = math.exp %542 : vector<8x20xf32>
    %cst_98 = arith.constant 1.000000e+00 : f32
    %544 = vector.broadcast %cst_98 : f32 to vector<8x20xf32>
    %545 = arith.addf %544, %543 : vector<8x20xf32>
    %546 = arith.divf %544, %545 : vector<8x20xf32>
    %547 = vector.extract_strided_slice %534 {offsets = [0, 40], sizes = [8, 20], strides = [1, 1]} : vector<8x80xf32> to vector<8x20xf32>
    %548 = math.tanh %547 : vector<8x20xf32>
    %549 = vector.extract_strided_slice %534 {offsets = [0, 60], sizes = [8, 20], strides = [1, 1]} : vector<8x80xf32> to vector<8x20xf32>
    %550 = arith.negf %549 : vector<8x20xf32>
    %551 = math.exp %550 : vector<8x20xf32>
    %cst_99 = arith.constant 1.000000e+00 : f32
    %552 = vector.broadcast %cst_99 : f32 to vector<8x20xf32>
    %553 = arith.addf %552, %551 : vector<8x20xf32>
    %554 = arith.divf %552, %553 : vector<8x20xf32>
    %555 = arith.mulf %546, %489 : vector<8x20xf32>
    %556 = arith.mulf %540, %548 : vector<8x20xf32>
    %557 = arith.addf %555, %556 : vector<8x20xf32>
    %558 = math.tanh %557 : vector<8x20xf32>
    %559 = arith.mulf %554, %558 : vector<8x20xf32>
    %560 = vector.extract_strided_slice %24 {offsets = [7, 0, 0], sizes = [1, 8, 20], strides = [1, 1, 1]} : vector<8x8x20xf32> to vector<1x8x20xf32>
    %561 = vector.shape_cast %560 : vector<1x8x20xf32> to vector<8x20xf32>
    %cst_100 = arith.constant dense<0.000000e+00> : vector<8x20xf32>
    %562 = tpu.matmul %496, %3, %cst_100 {dimension_numbers = #tpu.dot_dimension_numbers<[1], [0], [0], [1], [0, 0, 1, 1], [], []>} : vector<8x20xf32>, vector<20x20xf32>, vector<8x20xf32> -> vector<8x20xf32>
    %563 = arith.addf %561, %562 : vector<8x20xf32>
    %564 = math.tanh %563 : vector<8x20xf32>
    %565 = tpu.concatenate %564, %501 in 1 : vector<8x20xf32>, vector<8x20xf32> -> vector<8x40xf32>
    %cst_101 = arith.constant dense<0.000000e+00> : vector<8x20xf32>
    %566 = tpu.matmul %565, %4, %cst_101 {dimension_numbers = #tpu.dot_dimension_numbers<[1], [0], [0], [1], [0, 0, 1, 1], [], []>} : vector<8x40xf32>, vector<40x20xf32>, vector<8x20xf32> -> vector<8x20xf32>
    %567 = vector.broadcast %5 : vector<1x20xf32> to vector<8x20xf32>
    %568 = arith.addf %566, %567 : vector<8x20xf32>
    %569 = math.tanh %568 : vector<8x20xf32>
    %570 = tpu.concatenate %559, %569 in 1 : vector<8x20xf32>, vector<8x20xf32> -> vector<8x40xf32>
    %c0_102 = arith.constant 0 : index
    %c0_103 = arith.constant 0 : index
    %571 = vector.load %arg11[%c0_102, %c0_103] : memref<40x1xf32, #tpu.memory_space<vmem>>, vector<40x1xf32>
    %cst_104 = arith.constant dense<0.000000e+00> : vector<8x1xf32>
    %572 = tpu.matmul %570, %571, %cst_104 {dimension_numbers = #tpu.dot_dimension_numbers<[1], [0], [0], [1], [0, 0, 1, 1], [], []>} : vector<8x40xf32>, vector<40x1xf32>, vector<8x1xf32> -> vector<8x1xf32>
    %c0_105 = arith.constant 0 : index
    %c0_106 = arith.constant 0 : index
    %573 = vector.load %arg12[%c0_105, %c0_106] : memref<1x1xf32, #tpu.memory_space<vmem>>, vector<1x1xf32>
    %574 = vector.broadcast %573 : vector<1x1xf32> to vector<8x1xf32>
    %575 = arith.addf %572, %574 : vector<8x1xf32>
    %cst_107 = arith.constant 5.000000e-01 : f32
    %576 = vector.broadcast %cst_107 : f32 to vector<8x1xf32>
    %577 = arith.mulf %576, %575 : vector<8x1xf32>
    %cst_108 = arith.constant 0.000000e+00 : f32
    %578 = vector.broadcast %cst_108 : f32 to vector<8x1xf32>
    %579 = arith.maximumf %577, %578 : vector<8x1xf32>
    %c0_109 = arith.constant 0 : index
    %c0_110 = arith.constant 0 : index
    %580 = vector.load %arg13[%c0_109, %c0_110] : memref<8x1xf32, #tpu.memory_space<vmem>>, vector<8x1xf32>
    tpu.vector_store %arg13[%c0_109, %c0_110], %579 {strides = array<i32>} : memref<8x1xf32, #tpu.memory_space<vmem>>, vector<8x1xf32>,
    return
  }
}

</mosaic_0001>

<bundles_post_ra>
// kernel: ensemble_forward.1
= control target key start
LH: loop header
LB: loop body
LE: loop exit
PB: predicated region body
PF: predicated region fallthrough
CT: control target
= control target key end

     0   :  { %v4071_v0 = vmov 0.0|0.0   ;;  %vm4072_vm0 = vmmov 0   ;;  %v4073_v3 = vmov 0.0   ;;  %v4074_v5 = vmov 0   ;;  %s4075_s26 = smov 88   ;;  %s4076_s27 = smov 20   ;;  %s4839_s2 = inlined_call_operand.vmem [shape: f32[20,80], index: 2, kind: input, shape index: {}]   ;;  %s4840_s7 = inlined_call_operand.vmem [shape: f32[20,20], index: 7, kind: input, shape index: {}]   ;;  %s4841_s0 = inlined_call_operand.vmem [shape: f32[8,8,1], index: 0, kind: input, shape index: {}]   ;;  %s4842_s1 = inlined_call_operand.vmem [shape: f32[1,80], index: 1, kind: input, shape index: {}]   ;;  %s4843_s3 = inlined_call_operand.vmem [shape: f32[1,80], index: 3, kind: input, shape index: {}]   ;;  %s4844_s4 = inlined_call_operand.vmem [shape: f32[40,80], index: 4, kind: input, shape index: {}]   ;;  %s4845_s6 = inlined_call_operand.vmem [shape: f32[1,20], index: 6, kind: input, shape index: {}]   ;;  %s4846_s8 = inlined_call_operand.vmem [shape: f32[1,20], index: 8, kind: input, shape index: {}]   ;;  %s4847_s9 = inlined_call_operand.vmem [shape: f32[40,20], index: 9, kind: input, shape index: {}]   ;;  %s4848_s5 = inlined_call_operand.vmem [shape: f32[1,80], index: 5, kind: input, shape index: {}]   ;;  %s4849_s10 = inlined_call_operand.vmem [shape: f32[1,20], index: 10, kind: input, shape index: {}]   ;;  %s4850_s11 = inlined_call_operand.vmem [shape: f32[40,1], index: 11, kind: input, shape index: {}]   ;;  %s4851_s12 = inlined_call_operand.<no memory space> [shape: f32[1,1], index: 12, kind: input, shape index: {}]   ;;  %s4852_s13 = inlined_call_operand.vmem [shape: f32[8,1], index: 13, kind: output, shape index: {}]  }
   0x1   :  { %3742 = vmatprep.subr.bf16.mxu0 %v4071_v0  ;;  %v46_v1 = vld [vmem:[%s4839_s2] sm:$0xff]  ;;  %v47_v2 = vld [vmem:[%s4839_s2 + $0x8] sm:$0xff]  ;;  %3383 = vmatprep.mubr.msk.f32.mxu0 %vm4072_vm0, %v4073_v3  ;;  %v4177_v9 = vld [vmem:[%s4839_s2 + $0x10] sm:$0xf]  ;;  %vm176_vm1 = vcmask 1043456   ;;  %s4077_s21 = smov 40  }
   0x2   :  { %v4158_v4 = vpack.c.bf16 %v47_v2, %v46_v1  ;;  %3900 = vset.pattern.permute.xlu0 %v4074_v5  ;;  %3745 = vmatprep.subr.bf16.mxu1 %v4071_v0  ;;  %v55_v6 = vld [vmem:[%s4840_s7] sm:$0xff]  ;;  %v56_v7 = vld [vmem:[%s4840_s7 + $0x8] sm:$0xff]  ;;  %v4192_v11 = vld [vmem:[%s4840_s7 + $0x10] sm:$0xf]  ;;  %s4078_s22 = smov 68   ;;  %vm286_vm2 = vcmask 326656  }
   0x3   :  { %v64_v8 = vld [vmem:[%s4841_s0] sm:$0xff]  ;;  %3396 = vmatprep.mubr.msk.f32.mxu1 %vm4072_vm0, %v4073_v3  ;;  %3901 = vset.pattern.permute.xlu1 %v4074_v5  ;;  %v4179_v10 = vpack.c.bf16 %v56_v7, %v55_v6  ;;  %v50_v33 = vld [vmem:[%s4844_s4 + $0x8] sm:$0xff]  ;;  %v51_v34 = vld [vmem:[%s4844_s4 + $0x10] sm:$0xff]  ;;  %vm172_vm3 = vcmask 162816   ;;  %vm3135_vm4 = vcmask 7168  }
   0x4   :  { %3744 = vmatpush3.bf16.msra.mxu0 %v4158_v4  ;;  %75 = vperm.xlu0 %3900, %v64_v8   ;;  %v4208_v12 = vld [vmem:[%s4842_s1] ss:$0 sm:$0xff]  ;;  %v52_v36 = vld [vmem:[%s4844_s4 + $0x18] sm:$0xff]  ;;  %v65_v42 = vld [vmem:[%s4841_s0 + $0x8] sm:$0xff] }
   0x5   :  { %3381 = vmatprep.subr.mxu0 %v4073_v3  ;;  %v4214_v15 = vld [vmem:[%s4843_s3] ss:$0 sm:$0xff]  ;;  %v4237_v37 = vpack.c.bf16 %v52_v36, %v51_v34  ;;  %v59_v49 = vld [vmem:[%s4847_s9 + $0x8] sm:$0xff]  ;;  %v60_v52 = vld [vmem:[%s4847_s9 + $0x10] sm:$0xff] }
   0x6   :  { %v49_v32 = vld [vmem:[%s4844_s4] sm:$0xff]  ;;  %v61_v53 = vld [vmem:[%s4847_s9 + $0x18] sm:$0xff] }
   0x7   :  { %v4231_v35 = vpack.c.bf16 %v50_v33, %v49_v32  ;;  %v4245_v38 = vld [vmem:[%s4844_s4 + $0x20] sm:$0xff]  ;;  %v4285_v55 = vpack.c.bf16 %v61_v53, %v60_v52 }
   0x8   :  { %3382 = vmatpush3.msk.msra.mxu0 %vm176_vm1, %v4177_v9  ;;  %v4257_v43 = vld [vmem:[%s4845_s6] ss:$0 sm:$0xff] }
   0x9   :  { %3384 = vmatmul.mubr.f32.vlgmr.msra.gmra.mrb[0].mxu0 %v4073_v3  ;;  %3751 = vmatprep.subr.bf16.mxu0 %v4071_v0  ;;  %v4263_v45 = vld [vmem:[%s4846_s8] ss:$0 sm:$0xff] }
   0xa   :  { %3753 = vmatpush3.bf16.msra.mxu0 %v4179_v10  ;;  %3405 = vmatprep.mubr.msk.f32.mxu0 %vm4072_vm0, %v4073_v3  ;;  %v58_v48 = vld [vmem:[%s4847_s9] sm:$0xff] }
   0xb   :  { %3403 = vmatprep.subr.mxu0 %v4073_v3  ;;  %3747 = vmatpush3.bf16.msra.mxu1 %v4231_v35  ;;  %v4272_v50 = vpack.c.bf16 %v59_v49, %v58_v48  ;;  %v4300_v57 = vld [vmem:[%s4847_s9 + $0x20] sm:$0xff]  ;;  %v66_v48 = vld [vmem:[%s4841_s0 + $0x10] sm:$0xff] }
   0xc   :  { %3748 = vmatprep.subr.bf16.mxu1 %v4071_v0  ;;  %v4332_v62 = vld [vmem:[%s4848_s5] ss:$0 sm:$0xff] }
   0xe   :  { %3404 = vmatpush3.msk.msra.mxu0 %vm176_vm1, %v4192_v11 }
   0xf   :  { %3406 = vmatmul.mubr.f32.vlgmr.msra.gmra.mrb[2].mxu0 %v4073_v3  ;;  %3760 = vmatprep.subr.bf16.mxu0 %v4071_v0 }
  0x10   :  { %3762 = vmatpush3.bf16.msra.mxu0 %v4158_v4  ;;  %3427 = vmatprep.mubr.msk.f32.mxu0 %vm4072_vm0, %v4073_v3 }
  0x11   :  { %3425 = vmatprep.subr.mxu0 %v4073_v3  ;;  %3750 = vmatpush3.bf16.msra.mxu1 %v4237_v37 }
  0x12   :  { %3394 = vmatprep.subr.mxu1 %v4073_v3 }
  0x14   :  { %3426 = vmatpush3.msk.msra.mxu0 %vm176_vm1, %v4177_v9 }
  0x15   :  { %3763 = vmatprep.subr.bf16.mxu0 %v4071_v0  ;;  %3395 = vmatpush3.msra.mxu1 %v4245_v38 }
  0x16   :  { %3754 = vmatprep.subr.bf16.mxu1 %v4071_v0 }
  0x83   :  { %v76_v13 = vpop.permute.xlu0 %75 }
  0x84   :  { %v119_v14 = vmul.f32 %v4208_v12, %v76_v13  ;;  %v149_v44 = vmul.f32 %v4257_v43, %v76_v13 }
  0x86   :  { %v134_v16 = vadd.f32 %v4214_v15, %v119_v14  ;;  %v164_v46 = vadd.f32 %v4263_v45, %v149_v44 }
  0xdc   :  { %v246_v17 = vpop.f32.mrb[0].mxu0 }
  0xdd   :  { %v250_v18 = vadd.f32 %v246_v17, %v134_v16  ;;  %v3385_v19 = vpop.f32.mrb[1].mxu0 }
  0xdf   :  { %3902 = vtanh.f32 %v250_v18  ;;  %v3146_v23 = vmul.f32 -1.442695, %v250_v18 }
  0xe1   :  { %3904 = vpow2.f32 %v3146_v23 }
  0xe2   :  { %v453_v20 = vpop.f32.mrb[2].mxu0 }
  0xe3   :  { %v3407_v21 = vpop.f32.mrb[3].mxu0  ;;  %v457_v47 = vadd.f32 %v453_v20, %v164_v46 }
  0xe9   :  { %v3903_v22 = vpop.eup %3902 }
  0xea   :  { %260 = vrot.lane.b32.xlu0 %v3903_v22, %s4075_s26 }
  0xeb   :  { %v3905_v24 = vpop.eup %3904 }
  0xec   :  { %v254_v25 = vadd.f32 1.0, %v3905_v24 }
  0xee   :  { %3906 = vrcp.f32 %v254_v25 }
  0xf8   :  { %v3907_v26 = vpop.eup %3906 }
  0xf9   :  { %v258_v29 = vmul.f32 0.0, %v3907_v26 }
 0x15c   :  { %v261_v27 = vpop.permute.xlu0 %260 }
 0x15d   :  { %v263_v28 = vmul.f32 %v3907_v26, %v261_v27 }
 0x15f   :  { %265 = vrot.lane.b32.xlu1 %v263_v28, %s4076_s27 }
 0x1d1   :  { %v266_v30 = vpop.permute.xlu1 %265 }
 0x1d2   :  { %v4219_v31 = vadd.f32 %v266_v30, %v258_v29 }
 0x1d4   :  { %3908 = vtanh.f32 %v4219_v31 }
 0x1d5   :  { %3910 = vtanh.f32 %v457_v47 }
 0x1de   :  { %v3909_v39 = vpop.eup %3908 }
 0x1df   :  { %271 = vrot.lane.b32.xlu1 %v3909_v39, %s4077_s21  ;;  %v3911_v56 = vpop.eup %3910 }
 0x1e0   :  { %v459_v58 = vsel %vm172_vm3, %v3911_v56, 0.0 }
 0x1e3   :  { %80 = vperm.xlu1 %3901, %v65_v42  }
 0x251   :  { %v272_v40 = vpop.permute.xlu1 %271 }
 0x252   :  { %v274_v41 = vmul.f32 %v3907_v26, %v272_v40 }
 0x254   :  { %276 = vrot.lane.b32.xlu0 %v274_v41, %s4078_s22 }
 0x262   :  { %v4324_v59 = vpop.permute.xlu1 %80 }
 0x263   :  { %v120_v60 = vmul.f32 %v4208_v12, %v4324_v59 }
 0x265   :  { %v135_v61 = vadd.f32 %v4214_v15, %v120_v60 }
 0x2c6   :  { %v277_v51 = vpop.permute.xlu0 %276 }
 0x2c7   :  { %v279_v54 = vsel %vm172_vm3, %v277_v51, 0.0  ;;  %3428 = vmatmul.mubr.msk.f32.vlgmr.msra.gmra.mrb[4].mxu0 %vm172_vm3, %v277_v51 }
 0x2c8   :  { %3397 = vmatmul.mubr.msk.f32.vlgmr.msra.gmra.mrb[0].mxu1 %vm286_vm2, %v279_v54  ;;  %3765 = vmatpush3.bf16.msra.mxu0 %v4231_v35 }
 0x2c9   :  { %3756 = vmatpush3.bf16.msra.mxu1 %v4272_v50  ;;  %3418 = vmatprep.mubr.msk.f32.mxu1 %vm4072_vm0, %v4073_v3 }
 0x2ca   :  { %3757 = vmatprep.subr.bf16.mxu1 %v4071_v0  ;;  %3766 = vmatprep.subr.bf16.mxu0 %v4071_v0 }
 0x2cb   :  { %3440 = vmatprep.mubr.msk.f32.mxu0 %vm4072_vm0, %v4073_v3 }
 0x2cc   :  { %3768 = vmatpush3.bf16.msra.mxu0 %v4237_v37 }
 0x2cd   :  { %3759 = vmatpush3.bf16.msra.mxu1 %v4285_v55  ;;  %3438 = vmatprep.subr.mxu0 %v4073_v3 }
 0x2ce   :  { %3416 = vmatprep.subr.mxu1 %v4073_v3 }
 0x2d0   :  { %3439 = vmatpush3.msra.mxu0 %v4245_v38 }
 0x2d1   :  { %3417 = vmatpush3.msra.mxu1 %v4300_v57  ;;  %3778 = vmatprep.subr.bf16.mxu0 %v4071_v0 }
 0x2d2   :  { %3419 = vmatmul.mubr.msk.f32.vlgmr.msra.gmra.mrb[2].mxu1 %vm286_vm2, %v459_v58  ;;  %3769 = vmatprep.subr.bf16.mxu1 %v4071_v0 }
 0x2d3   :  { %3771 = vmatpush3.bf16.msra.mxu1 %v4179_v10  ;;  %3449 = vmatprep.mubr.msk.f32.mxu1 %vm4072_vm0, %v4073_v3 }
 0x2d4   :  { %3447 = vmatprep.subr.mxu1 %v4073_v3 }
 0x2d7   :  { %3448 = vmatpush3.msk.msra.mxu1 %vm176_vm1, %v4192_v11 }
 0x2d8   :  { %3450 = vmatmul.mubr.msk.f32.vlgmr.msra.gmra.mrb[4].mxu1 %vm172_vm3, %v3911_v56  ;;  %3772 = vmatprep.subr.bf16.mxu1 %v4071_v0 }
 0x2d9   :  { %3774 = vmatpush3.bf16.msra.mxu1 %v4272_v50  ;;  %3462 = vmatprep.mubr.msk.f32.mxu1 %vm4072_vm0, %v4073_v3 }
 0x2da   :  { %3775 = vmatprep.subr.bf16.mxu1 %v4071_v0 }
 0x2dd   :  { %3777 = vmatpush3.bf16.msra.mxu1 %v4285_v55 }
 0x2de   :  { %3460 = vmatprep.subr.mxu1 %v4073_v3 }
 0x2e1   :  { %3461 = vmatpush3.msra.mxu1 %v4300_v57 }
 0x2e2   :  { %3787 = vmatprep.subr.bf16.mxu1 %v4071_v0 }
 0x39a   :  { %v608_v63 = vpop.f32.mrb[4].mxu0 }
 0x39b   :  { %v612_v1 = vadd.f32 %v608_v63, %v135_v61  ;;  %v356_v2 = vpop.f32.mrb[0].mxu1  ;;  %v3429_v5 = vpop.f32.mrb[5].mxu0 }
 0x39c   :  { %v357_v6 = vadd.f32 %v4332_v62, %v356_v2  ;;  %v3398_v7 = vpop.f32.mrb[1].mxu1 }
 0x39d   :  { %3912 = vtanh.f32 %v612_v1  ;;  %v3155_v19 = vmul.f32 -1.442695, %v612_v1 }
 0x39e   :  { %3914 = vtanh.f32 %v357_v6  ;;  %v3149_v20 = vmul.f32 -1.442695, %v357_v6 }
 0x39f   :  { %3916 = vpow2.f32 %v3155_v19 }
 0x3a0   :  { %3918 = vpow2.f32 %v3149_v20 }
 0x3a5   :  { %v4335_v8 = vpop.f32.mrb[2].mxu1 }
 0x3a6   :  { %v3420_v13 = vpop.f32.mrb[3].mxu1 }
 0x3a7   :  { %v3913_v14 = vpop.eup %3912 }
 0x3a8   :  { %v3915_v16 = vpop.eup %3914  ;;  %622 = vrot.lane.b32.xlu1 %v3913_v14, %s4075_s26 }
 0x3a9   :  { %369 = vrot.lane.b32.xlu0 %v3915_v16, %s4075_s26  ;;  %v3917_v21 = vpop.eup %3916 }
 0x3aa   :  { %v3919_v22 = vpop.eup %3918  ;;  %v616_v23 = vadd.f32 1.0, %v3917_v21 }
 0x3ab   :  { %v4339_v17 = vpop.f32.mrb[4].mxu1  ;;  %v363_v24 = vadd.f32 1.0, %v3919_v22 }
 0x3ac   :  { %v3451_v18 = vpop.f32.mrb[5].mxu1  ;;  %3920 = vrcp.f32 %v616_v23 }
 0x3ad   :  { %3922 = vrcp.f32 %v363_v24 }
 0x3b6   :  { %v3921_v25 = vpop.eup %3920 }
 0x3b7   :  { %v3923_v27 = vpop.eup %3922  ;;  %v620_v32 = vmul.f32 %v3921_v25, %v4219_v31 }
 0x3b8   :  { %v367_v34 = vmul.f32 0.0, %v3923_v27 }
 0x41a   :  { %v623_v26 = vpop.permute.xlu1 %622 }
 0x41b   :  { %v625_v28 = vmul.f32 %v3921_v25, %v623_v26  ;;  %v370_v29 = vpop.permute.xlu0 %369 }
 0x41c   :  { %v372_v30 = vmul.f32 %v3923_v27, %v370_v29 }
 0x41d   :  { %627 = vrot.lane.b32.xlu1 %v625_v28, %s4076_s27 }
 0x41e   :  { %374 = vrot.lane.b32.xlu0 %v372_v30, %s4076_s27 }
 0x48f   :  { %v628_v33 = vpop.permute.xlu1 %627 }
 0x490   :  { %v4344_v36 = vadd.f32 %v628_v33, %v620_v32  ;;  %v375_v39 = vpop.permute.xlu0 %374 }
 0x491   :  { %v4346_v40 = vadd.f32 %v375_v39, %v367_v34 }
 0x492   :  { %3924 = vtanh.f32 %v4344_v36 }
 0x493   :  { %3926 = vtanh.f32 %v4346_v40 }
 0x49c   :  { %v3925_v41 = vpop.eup %3924 }
 0x49d   :  { %v3927_v42 = vpop.eup %3926  ;;  %633 = vrot.lane.b32.xlu1 %v3925_v41, %s4077_s21 }
 0x49e   :  { %380 = vrot.lane.b32.xlu0 %v3927_v42, %s4077_s21 }
 0x50f   :  { %v634_v44 = vpop.permute.xlu1 %633 }
 0x510   :  { %v636_v46 = vmul.f32 %v3921_v25, %v634_v44  ;;  %v381_v31 = vpop.permute.xlu0 %380 }
 0x511   :  { %v383_v47 = vmul.f32 %v3923_v27, %v381_v31 }
 0x512   :  { %638 = vrot.lane.b32.xlu0 %v636_v46, %s4078_s22 }
 0x513   :  { %642 = vrot.lane.b32.xlu1 %v383_v47, %s4075_s26 }
 0x516   :  { %85 = vperm.xlu0 %3900, %v66_v48  }
 0x584   :  { %v639_v49 = vpop.permute.xlu0 %638 }
 0x585   :  { %v643_v51 = vpop.permute.xlu1 %642 }
 0x586   :  { %v645_v52 = vsel %vm172_vm3, %v639_v49, %v643_v51 }
 0x587   :  { %3441 = vmatmul.mubr.msk.f32.vlgmr.msra.gmra.mrb[6].mxu0 %vm286_vm2, %v645_v52 }
 0x588   :  { %3780 = vmatpush3.bf16.msra.mxu0 %v4158_v4  ;;  %3471 = vmatprep.mubr.msk.f32.mxu0 %vm4072_vm0, %v4073_v3 }
 0x589   :  { %3469 = vmatprep.subr.mxu0 %v4073_v3 }
 0x58c   :  { %3470 = vmatpush3.msk.msra.mxu0 %vm176_vm1, %v4177_v9 }
 0x58d   :  { %3472 = vmatmul.mubr.msk.f32.vlgmr.msra.gmra.mrb[8].mxu0 %vm172_vm3, %v639_v49  ;;  %3781 = vmatprep.subr.bf16.mxu0 %v4071_v0 }
 0x58e   :  { %3783 = vmatpush3.bf16.msra.mxu0 %v4231_v35  ;;  %3484 = vmatprep.mubr.msk.f32.mxu0 %vm4072_vm0, %v4073_v3 }
 0x58f   :  { %3784 = vmatprep.subr.bf16.mxu0 %v4071_v0 }
 0x592   :  { %3786 = vmatpush3.bf16.msra.mxu0 %v4237_v37 }
 0x593   :  { %3482 = vmatprep.subr.mxu0 %v4073_v3 }
 0x595   :  { %v4375_v53 = vpop.permute.xlu0 %85 }
 0x596   :  { %3483 = vmatpush3.msra.mxu0 %v4245_v38  ;;  %v121_v56 = vmul.f32 %v4208_v12, %v4375_v53 }
 0x597   :  { %3796 = vmatprep.subr.bf16.mxu0 %v4071_v0 }
 0x598   :  { %v136_v61 = vadd.f32 %v4214_v15, %v121_v56 }
 0x65a   :  { %v715_v54 = vpop.f32.mrb[6].mxu0 }
 0x65b   :  { %v716_v58 = vadd.f32 %v4332_v62, %v715_v54  ;;  %v3442_v60 = vpop.f32.mrb[7].mxu0 }
 0x65d   :  { %3928 = vtanh.f32 %v716_v58  ;;  %v3157_v7 = vmul.f32 -1.442695, %v716_v58 }
 0x660   :  { %v965_v63 = vpop.f32.mrb[8].mxu0 }
 0x661   :  { %v969_v1 = vadd.f32 %v965_v63, %v136_v61  ;;  %v3473_v2 = vpop.f32.mrb[9].mxu0 }
 0x663   :  { %3930 = vtanh.f32 %v969_v1  ;;  %v3163_v13 = vmul.f32 -1.442695, %v969_v1 }
 0x664   :  { %3932 = vpow2.f32 %v3157_v7 }
 0x665   :  { %3934 = vpow2.f32 %v3163_v13 }
 0x667   :  { %v3929_v5 = vpop.eup %3928 }
 0x668   :  { %728 = vrot.lane.b32.xlu1 %v3929_v5, %s4075_s26 }
 0x66d   :  { %v3931_v6 = vpop.eup %3930 }
 0x66e   :  { %979 = vrot.lane.b32.xlu0 %v3931_v6, %s4075_s26  ;;  %v3933_v14 = vpop.eup %3932 }
 0x66f   :  { %v722_v16 = vadd.f32 1.0, %v3933_v14  ;;  %v3935_v18 = vpop.eup %3934 }
 0x670   :  { %v973_v19 = vadd.f32 1.0, %v3935_v18 }
 0x671   :  { %3936 = vrcp.f32 %v722_v16 }
 0x672   :  { %3938 = vrcp.f32 %v973_v19 }
 0x67b   :  { %v3937_v20 = vpop.eup %3936 }
 0x67c   :  { %v3939_v23 = vpop.eup %3938  ;;  %v726_v26 = vmul.f32 %v3937_v20, %v4346_v40 }
 0x67d   :  { %v977_v29 = vmul.f32 %v3939_v23, %v4344_v36  ;;  %v67_v36 = vld [vmem:[%s4841_s0 + $0x18] sm:$0xff] }
 0x6da   :  { %v729_v21 = vpop.permute.xlu1 %728 }
 0x6db   :  { %v731_v22 = vmul.f32 %v3937_v20, %v729_v21 }
 0x6dd   :  { %733 = vrot.lane.b32.xlu1 %v731_v22, %s4076_s27 }
 0x6e0   :  { %v980_v24 = vpop.permute.xlu0 %979 }
 0x6e1   :  { %v982_v25 = vmul.f32 %v3939_v23, %v980_v24 }
 0x6e3   :  { %984 = vrot.lane.b32.xlu0 %v982_v25, %s4076_s27 }
 0x74f   :  { %v734_v27 = vpop.permute.xlu1 %733 }
 0x750   :  { %v4386_v28 = vadd.f32 %v734_v27, %v726_v26 }
 0x752   :  { %3940 = vtanh.f32 %v4386_v28 }
 0x755   :  { %v985_v30 = vpop.permute.xlu0 %984 }
 0x756   :  { %v4390_v32 = vadd.f32 %v985_v30, %v977_v29 }
 0x758   :  { %3942 = vtanh.f32 %v4390_v32 }
 0x75c   :  { %v3941_v33 = vpop.eup %3940 }
 0x75d   :  { %739 = vrot.lane.b32.xlu1 %v3941_v33, %s4077_s21 }
 0x762   :  { %v3943_v34 = vpop.eup %3942 }
 0x763   :  { %990 = vrot.lane.b32.xlu0 %v3943_v34, %s4077_s21 }
 0x7cf   :  { %v740_v39 = vpop.permute.xlu1 %739 }
 0x7d0   :  { %v742_v40 = vmul.f32 %v3937_v20, %v740_v39 }
 0x7d2   :  { %999 = vrot.lane.b32.xlu0 %v742_v40, %s4075_s26 }
 0x7d5   :  { %v991_v41 = vpop.permute.xlu0 %990 }
 0x7d6   :  { %v993_v42 = vmul.f32 %v3939_v23, %v991_v41 }
 0x7d8   :  { %995 = vrot.lane.b32.xlu1 %v993_v42, %s4078_s22 }
 0x7dc   :  { %90 = vperm.xlu1 %3901, %v67_v36  }
 0x844   :  { %v1000_v44 = vpop.permute.xlu0 %999 }
 0x84a   :  { %v996_v46 = vpop.permute.xlu1 %995 }
 0x84b   :  { %v1002_v31 = vsel %vm172_vm3, %v996_v46, %v1000_v44 }
 0x84c   :  { %3485 = vmatmul.mubr.msk.f32.vlgmr.msra.gmra.mrb[10].mxu0 %vm286_vm2, %v1002_v31 }
 0x84d   :  { %3798 = vmatpush3.bf16.msra.mxu0 %v4158_v4  ;;  %3515 = vmatprep.mubr.msk.f32.mxu0 %vm4072_vm0, %v4073_v3 }
 0x84e   :  { %3513 = vmatprep.subr.mxu0 %v4073_v3 }
 0x851   :  { %3514 = vmatpush3.msk.msra.mxu0 %vm176_vm1, %v4177_v9 }
 0x852   :  { %3516 = vmatmul.mubr.msk.f32.vlgmr.msra.gmra.mrb[12].mxu0 %vm172_vm3, %v996_v46  ;;  %3799 = vmatprep.subr.bf16.mxu0 %v4071_v0 }
 0x853   :  { %3801 = vmatpush3.bf16.msra.mxu0 %v4231_v35  ;;  %3528 = vmatprep.mubr.msk.f32.mxu0 %vm4072_vm0, %v4073_v3 }
 0x854   :  { %3802 = vmatprep.subr.bf16.mxu0 %v4071_v0 }
 0x857   :  { %3804 = vmatpush3.bf16.msra.mxu0 %v4237_v37 }
 0x858   :  { %3526 = vmatprep.subr.mxu0 %v4073_v3 }
 0x85b   :  { %3527 = vmatpush3.msra.mxu0 %v4245_v38  ;;  %v4418_v47 = vpop.permute.xlu1 %90 }
 0x85c   :  { %3814 = vmatprep.subr.bf16.mxu0 %v4071_v0  ;;  %v122_v49 = vmul.f32 %v4208_v12, %v4418_v47 }
 0x85e   :  { %v137_v54 = vadd.f32 %v4214_v15, %v122_v49 }
 0x91f   :  { %v1072_v48 = vpop.f32.mrb[10].mxu0 }
 0x920   :  { %v1073_v51 = vadd.f32 %v4332_v62, %v1072_v48  ;;  %v3486_v52 = vpop.f32.mrb[11].mxu0 }
 0x922   :  { %3944 = vtanh.f32 %v1073_v51  ;;  %v3165_v1 = vmul.f32 -1.442695, %v1073_v51 }
 0x925   :  { %v1322_v56 = vpop.f32.mrb[12].mxu0 }
 0x926   :  { %v1326_v58 = vadd.f32 %v1322_v56, %v137_v54  ;;  %v3517_v60 = vpop.f32.mrb[13].mxu0 }
 0x928   :  { %3946 = vtanh.f32 %v1326_v58  ;;  %v3171_v2 = vmul.f32 -1.442695, %v1326_v58 }
 0x929   :  { %3948 = vpow2.f32 %v3165_v1 }
 0x92a   :  { %3950 = vpow2.f32 %v3171_v2  ;;  %v4472_v2 = vld [vmem:[%s4849_s10] ss:$0 sm:$0xff] }
 0x92c   :  { %v3945_v61 = vpop.eup %3944 }
 0x92d   :  { %1085 = vrot.lane.b32.xlu0 %v3945_v61, %s4075_s26 }
 0x932   :  { %v3947_v63 = vpop.eup %3946 }
 0x933   :  { %1336 = vrot.lane.b32.xlu1 %v3947_v63, %s4075_s26  ;;  %v3949_v5 = vpop.eup %3948 }
 0x934   :  { %v1079_v6 = vadd.f32 1.0, %v3949_v5  ;;  %v3951_v7 = vpop.eup %3950 }
 0x935   :  { %v1330_v13 = vadd.f32 1.0, %v3951_v7 }
 0x936   :  { %3952 = vrcp.f32 %v1079_v6  ;;  %v536_v6 = vadd.f32 %v4472_v2, %v4335_v8 }
 0x937   :  { %3954 = vrcp.f32 %v1330_v13 }
 0x940   :  { %v3953_v14 = vpop.eup %3952 }
 0x941   :  { %v3955_v19 = vpop.eup %3954  ;;  %v1083_v22 = vmul.f32 %v3953_v14, %v4386_v28 }
 0x942   :  { %v1334_v25 = vmul.f32 %v3955_v19, %v4390_v32  ;;  %v68_v32 = vld [vmem:[%s4841_s0 + $0x20] sm:$0xff] }
 0x99f   :  { %v1086_v16 = vpop.permute.xlu0 %1085 }
 0x9a0   :  { %v1088_v18 = vmul.f32 %v3953_v14, %v1086_v16 }
 0x9a2   :  { %1090 = vrot.lane.b32.xlu0 %v1088_v18, %s4076_s27 }
 0x9a5   :  { %v1337_v20 = vpop.permute.xlu1 %1336 }
 0x9a6   :  { %v1339_v21 = vmul.f32 %v3955_v19, %v1337_v20 }
 0x9a8   :  { %1341 = vrot.lane.b32.xlu1 %v1339_v21, %s4076_s27 }
 0xa14   :  { %v1091_v23 = vpop.permute.xlu0 %1090 }
 0xa15   :  { %v4429_v24 = vadd.f32 %v1091_v23, %v1083_v22  ;;  %v150_v22 = vmul.f32 %v4257_v43, %v4324_v59 }
 0xa17   :  { %3956 = vtanh.f32 %v4429_v24  ;;  %v165_v8 = vadd.f32 %v4263_v45, %v150_v22 }
 0xa19   :  { %v816_v23 = vadd.f32 %v4339_v17, %v165_v8 }
 0xa1a   :  { %v1342_v26 = vpop.permute.xlu1 %1341 }
 0xa1b   :  { %v4433_v27 = vadd.f32 %v1342_v26, %v1334_v25 }
 0xa1d   :  { %3958 = vtanh.f32 %v4433_v27 }
 0xa21   :  { %v3957_v29 = vpop.eup %3956 }
 0xa22   :  { %1096 = vrot.lane.b32.xlu0 %v3957_v29, %s4077_s21 }
 0xa27   :  { %v3959_v30 = vpop.eup %3958 }
 0xa28   :  { %1347 = vrot.lane.b32.xlu1 %v3959_v30, %s4077_s21 }
 0xa94   :  { %v1097_v33 = vpop.permute.xlu0 %1096 }
 0xa95   :  { %v1099_v28 = vmul.f32 %v3953_v14, %v1097_v33 }
 0xa97   :  { %1356 = vrot.lane.b32.xlu1 %v1099_v28, %s4075_s26 }
 0xa9a   :  { %v1348_v34 = vpop.permute.xlu1 %1347 }
 0xa9b   :  { %v1350_v39 = vmul.f32 %v3955_v19, %v1348_v34 }
 0xa9d   :  { %1352 = vrot.lane.b32.xlu0 %v1350_v39, %s4078_s22 }
 0xaa1   :  { %95 = vperm.xlu0 %3900, %v68_v32  }
 0xb09   :  { %v1357_v40 = vpop.permute.xlu1 %1356 }
 0xb0f   :  { %v1353_v41 = vpop.permute.xlu0 %1352 }
 0xb10   :  { %v1359_v42 = vsel %vm172_vm3, %v1353_v41, %v1357_v40 }
 0xb11   :  { %3529 = vmatmul.mubr.msk.f32.vlgmr.msra.gmra.mrb[14].mxu0 %vm286_vm2, %v1359_v42  ;;  %v69_v42 = vld [vmem:[%s4841_s0 + $0x28] sm:$0xff] }
 0xb12   :  { %3816 = vmatpush3.bf16.msra.mxu0 %v4158_v4  ;;  %3559 = vmatprep.mubr.msk.f32.mxu0 %vm4072_vm0, %v4073_v3 }
 0xb13   :  { %3557 = vmatprep.subr.mxu0 %v4073_v3 }
 0xb16   :  { %3558 = vmatpush3.msk.msra.mxu0 %vm176_vm1, %v4177_v9 }
 0xb17   :  { %3560 = vmatmul.mubr.msk.f32.vlgmr.msra.gmra.mrb[16].mxu0 %vm172_vm3, %v1353_v41  ;;  %3817 = vmatprep.subr.bf16.mxu0 %v4071_v0 }
 0xb18   :  { %3819 = vmatpush3.bf16.msra.mxu0 %v4231_v35  ;;  %3572 = vmatprep.mubr.msk.f32.mxu0 %vm4072_vm0, %v4073_v3 }
 0xb19   :  { %3820 = vmatprep.subr.bf16.mxu0 %v4071_v0 }
 0xb1c   :  { %3822 = vmatpush3.bf16.msra.mxu0 %v4237_v37 }
 0xb1d   :  { %3570 = vmatprep.subr.mxu0 %v4073_v3 }
 0xb20   :  { %3571 = vmatpush3.msra.mxu0 %v4245_v38  ;;  %v4461_v36 = vpop.permute.xlu0 %95 }
 0xb21   :  { %3832 = vmatprep.subr.bf16.mxu0 %v4071_v0  ;;  %v123_v46 = vmul.f32 %v4208_v12, %v4461_v36 }
 0xb23   :  { %v138_v49 = vadd.f32 %v4214_v15, %v123_v46 }
 0xbe4   :  { %v1429_v44 = vpop.f32.mrb[14].mxu0 }
 0xbe5   :  { %v1430_v31 = vadd.f32 %v4332_v62, %v1429_v44  ;;  %v3530_v48 = vpop.f32.mrb[15].mxu0 }
 0xbe7   :  { %3960 = vtanh.f32 %v1430_v31  ;;  %v3173_v60 = vmul.f32 -1.442695, %v1430_v31 }
 0xbea   :  { %v1679_v51 = vpop.f32.mrb[16].mxu0 }
 0xbeb   :  { %v1683_v52 = vadd.f32 %v1679_v51, %v138_v49  ;;  %v3561_v54 = vpop.f32.mrb[17].mxu0 }
 0xbed   :  { %3962 = vtanh.f32 %v1683_v52  ;;  %v3179_v61 = vmul.f32 -1.442695, %v1683_v52 }
 0xbee   :  { %3964 = vpow2.f32 %v3173_v60 }
 0xbef   :  { %3966 = vpow2.f32 %v3179_v61 }
 0xbf1   :  { %v3961_v56 = vpop.eup %3960 }
 0xbf2   :  { %1442 = vrot.lane.b32.xlu1 %v3961_v56, %s4075_s26 }
 0xbf7   :  { %v3963_v58 = vpop.eup %3962 }
 0xbf8   :  { %1693 = vrot.lane.b32.xlu0 %v3963_v58, %s4075_s26  ;;  %v3965_v63 = vpop.eup %3964 }
 0xbf9   :  { %v1436_v1 = vadd.f32 1.0, %v3965_v63  ;;  %v3967_v5 = vpop.eup %3966 }
 0xbfa   :  { %v1687_v7 = vadd.f32 1.0, %v3967_v5 }
 0xbfb   :  { %3968 = vrcp.f32 %v1436_v1 }
 0xbfc   :  { %3970 = vtanh.f32 %v536_v6 }
 0xbfd   :  { %3972 = vrcp.f32 %v1687_v7 }
 0xbfe   :  { %3974 = vtanh.f32 %v816_v23 }
 0xc05   :  { %v3969_v13 = vpop.eup %3968 }
 0xc06   :  { %v3971_v18 = vpop.eup %3970  ;;  %v1440_v25 = vmul.f32 %v3969_v13, %v4429_v24 }
 0xc07   :  { %v3973_v19 = vpop.eup %3972 }
 0xc08   :  { %v3975_v30 = vpop.eup %3974  ;;  %v1691_v34 = vmul.f32 %v3973_v19, %v4433_v27 }
 0xc64   :  { %v1443_v14 = vpop.permute.xlu1 %1442 }
 0xc65   :  { %v1445_v16 = vmul.f32 %v3969_v13, %v1443_v14 }
 0xc67   :  { %1447 = vrot.lane.b32.xlu1 %v1445_v16, %s4076_s27 }
 0xc6a   :  { %v1694_v20 = vpop.permute.xlu0 %1693 }
 0xc6b   :  { %v1696_v21 = vmul.f32 %v3973_v19, %v1694_v20  ;;  %819 = vrot.lane.b32.xlu1 %v3971_v18, %s4076_s27 }
 0xc6d   :  { %1698 = vrot.lane.b32.xlu0 %v1696_v21, %s4076_s27 }
 0xcd9   :  { %v1448_v26 = vpop.permute.xlu1 %1447 }
 0xcda   :  { %v4484_v29 = vadd.f32 %v1448_v26, %v1440_v25 }
 0xcdc   :  { %3976 = vtanh.f32 %v4484_v29 }
 0xcdd   :  { %v820_v33 = vpop.permute.xlu1 %819 }
 0xcde   :  { %v822_v28 = vsel %vm172_vm3, %v3975_v30, %v820_v33 }
 0xcdf   :  { %v1699_v39 = vpop.permute.xlu0 %1698  ;;  %3463 = vmatmul.mubr.msk.f32.vlgmr.msra.gmra.mrb[6].mxu1 %vm286_vm2, %v822_v28 }
 0xce0   :  { %v4490_v59 = vadd.f32 %v1699_v39, %v1691_v34  ;;  %3789 = vmatpush3.bf16.msra.mxu1 %v4179_v10  ;;  %3493 = vmatprep.mubr.msk.f32.mxu1 %vm4072_vm0, %v4073_v3 }
 0xce1   :  { %3491 = vmatprep.subr.mxu1 %v4073_v3 }
 0xce2   :  { %3978 = vtanh.f32 %v4490_v59 }
 0xce4   :  { %3492 = vmatpush3.msk.msra.mxu1 %vm176_vm1, %v4192_v11 }
 0xce5   :  { %3494 = vmatmul.mubr.msk.f32.vlgmr.msra.gmra.mrb[8].mxu1 %vm172_vm3, %v3975_v30  ;;  %3790 = vmatprep.subr.bf16.mxu1 %v4071_v0 }
 0xce6   :  { %v3977_v17 = vpop.eup %3976  ;;  %3792 = vmatpush3.bf16.msra.mxu1 %v4272_v50  ;;  %3506 = vmatprep.mubr.msk.f32.mxu1 %vm4072_vm0, %v4073_v3 }
 0xce7   :  { %1453 = vrot.lane.b32.xlu0 %v3977_v17, %s4077_s21  ;;  %3793 = vmatprep.subr.bf16.mxu1 %v4071_v0 }
 0xcea   :  { %3795 = vmatpush3.bf16.msra.mxu1 %v4285_v55 }
 0xceb   :  { %3504 = vmatprep.subr.mxu1 %v4073_v3 }
 0xcec   :  { %v3979_v24 = vpop.eup %3978 }
 0xced   :  { %1704 = vrot.lane.b32.xlu1 %v3979_v24, %s4077_s21 }
 0xcee   :  { %3505 = vmatpush3.msra.mxu1 %v4300_v57 }
 0xcef   :  { %3805 = vmatprep.subr.bf16.mxu1 %v4071_v0 }
 0xd59   :  { %v1454_v27 = vpop.permute.xlu0 %1453 }
 0xd5a   :  { %v1456_v32 = vmul.f32 %v3969_v13, %v1454_v27 }
 0xd5c   :  { %1713 = vrot.lane.b32.xlu1 %v1456_v32, %s4075_s26 }
 0xd5f   :  { %v1705_v40 = vpop.permute.xlu1 %1704 }
 0xd60   :  { %v1707_v41 = vmul.f32 %v3973_v19, %v1705_v40 }
 0xd62   :  { %1709 = vrot.lane.b32.xlu0 %v1707_v41, %s4078_s22 }
 0xd66   :  { %100 = vperm.xlu0 %3900, %v69_v42  }
 0xdb2   :  { %v892_v44 = vpop.f32.mrb[6].mxu1 }
 0xdb3   :  { %v893_v46 = vadd.f32 %v4472_v2, %v892_v44  ;;  %v3464_v31 = vpop.f32.mrb[7].mxu1 }
 0xdb5   :  { %3980 = vtanh.f32 %v893_v46 }
 0xdb8   :  { %v1169_v48 = vpop.f32.mrb[8].mxu1 }
 0xdb9   :  { %v3495_v49 = vpop.f32.mrb[9].mxu1 }
 0xdbf   :  { %v3981_v51 = vpop.eup %3980 }
 0xdc0   :  { %1176 = vrot.lane.b32.xlu1 %v3981_v51, %s4076_s27 }
 0xdce   :  { %v1714_v52 = vpop.permute.xlu1 %1713 }
 0xdd4   :  { %v1710_v54 = vpop.permute.xlu0 %1709 }
 0xdd5   :  { %v1716_v56 = vsel %vm172_vm3, %v1710_v54, %v1714_v52 }
 0xdd6   :  { %3573 = vmatmul.mubr.msk.f32.vlgmr.msra.gmra.mrb[18].mxu0 %vm286_vm2, %v1716_v56 }
 0xdd7   :  { %3834 = vmatpush3.bf16.msra.mxu0 %v4158_v4  ;;  %3603 = vmatprep.mubr.msk.f32.mxu0 %vm4072_vm0, %v4073_v3 }
 0xdd8   :  { %3601 = vmatprep.subr.mxu0 %v4073_v3 }
 0xddb   :  { %3602 = vmatpush3.msk.msra.mxu0 %vm176_vm1, %v4177_v9  ;;  %v151_v9 = vmul.f32 %v4257_v43, %v4375_v53 }
 0xddc   :  { %3604 = vmatmul.mubr.msk.f32.vlgmr.msra.gmra.mrb[20].mxu0 %vm172_vm3, %v1710_v54  ;;  %3835 = vmatprep.subr.bf16.mxu0 %v4071_v0 }
 0xddd   :  { %3837 = vmatpush3.bf16.msra.mxu0 %v4231_v35  ;;  %3616 = vmatprep.mubr.msk.f32.mxu0 %vm4072_vm0, %v4073_v3  ;;  %v166_v58 = vadd.f32 %v4263_v45, %v151_v9  ;;  %v152_v9 = vmul.f32 %v4257_v43, %v4418_v47  ;;  %v4614_v47 = vld [vmem:[%s4840_s7 + $0x10] sm:$0xf] }
 0xdde   :  { %3838 = vmatprep.subr.bf16.mxu0 %v4071_v0 }
 0xddf   :  { %v1173_v60 = vadd.f32 %v1169_v48, %v166_v58  ;;  %v167_v58 = vadd.f32 %v4263_v45, %v152_v9  ;;  %v4599_v45 = vld [vmem:[%s4839_s2 + $0x10] sm:$0xf] }
 0xde1   :  { %3840 = vmatpush3.bf16.msra.mxu0 %v4237_v37  ;;  %3982 = vtanh.f32 %v1173_v60 }
 0xde2   :  { %3614 = vmatprep.subr.mxu0 %v4073_v3 }
 0xde5   :  { %3615 = vmatpush3.msra.mxu0 %v4245_v38 }
 0xde6   :  { %3850 = vmatprep.subr.bf16.mxu0 %v4071_v0 }
 0xdeb   :  { %v3983_v61 = vpop.eup %3982 }
 0xe32   :  { %v1177_v63 = vpop.permute.xlu1 %1176 }
 0xe33   :  { %v1179_v1 = vsel %vm172_vm3, %v3983_v61, %v1177_v63 }
 0xe34   :  { %3507 = vmatmul.mubr.msk.f32.vlgmr.msra.gmra.mrb[10].mxu1 %vm286_vm2, %v1179_v1 }
 0xe35   :  { %3807 = vmatpush3.bf16.msra.mxu1 %v4179_v10  ;;  %3537 = vmatprep.mubr.msk.f32.mxu1 %vm4072_vm0, %v4073_v3 }
 0xe36   :  { %3535 = vmatprep.subr.mxu1 %v4073_v3 }
 0xe39   :  { %3536 = vmatpush3.msk.msra.mxu1 %vm176_vm1, %v4192_v11  ;;  %v4557_v11 = vpop.permute.xlu0 %100 }
 0xe3a   :  { %3538 = vmatmul.mubr.msk.f32.vlgmr.msra.gmra.mrb[12].mxu1 %vm172_vm3, %v3983_v61  ;;  %3808 = vmatprep.subr.bf16.mxu1 %v4071_v0  ;;  %v124_v5 = vmul.f32 %v4208_v12, %v4557_v11 }
 0xe3b   :  { %3810 = vmatpush3.bf16.msra.mxu1 %v4272_v50  ;;  %3550 = vmatprep.mubr.msk.f32.mxu1 %vm4072_vm0, %v4073_v3 }
 0xe3c   :  { %3811 = vmatprep.subr.bf16.mxu1 %v4071_v0  ;;  %v139_v13 = vadd.f32 %v4214_v15, %v124_v5 }
 0xe3f   :  { %3813 = vmatpush3.bf16.msra.mxu1 %v4285_v55 }
 0xe40   :  { %3548 = vmatprep.subr.mxu1 %v4073_v3 }
 0xe43   :  { %3549 = vmatpush3.msra.mxu1 %v4300_v57 }
 0xe44   :  { %3823 = vmatprep.subr.bf16.mxu1 %v4071_v0 }
 0xea9   :  { %v1786_v53 = vpop.f32.mrb[18].mxu0 }
 0xeaa   :  { %v1787_v6 = vadd.f32 %v4332_v62, %v1786_v53  ;;  %v3574_v7 = vpop.f32.mrb[19].mxu0 }
 0xeac   :  { %3984 = vtanh.f32 %v1787_v6  ;;  %v3181_v8 = vmul.f32 -1.442695, %v1787_v6 }
 0xeaf   :  { %v2036_v14 = vpop.f32.mrb[20].mxu0 }
 0xeb0   :  { %v2040_v16 = vadd.f32 %v2036_v14, %v139_v13  ;;  %v3605_v18 = vpop.f32.mrb[21].mxu0  ;;  %v4638_v13 = vld [vmem:[%s4842_s1] ss:$0 sm:$0xff] }
 0xeb2   :  { %3986 = vtanh.f32 %v2040_v16  ;;  %v3187_v25 = vmul.f32 -1.442695, %v2040_v16 }
 0xeb3   :  { %3988 = vpow2.f32 %v3181_v8 }
 0xeb4   :  { %3990 = vpow2.f32 %v3187_v25 }
 0xeb6   :  { %v3985_v19 = vpop.eup %3984 }
 0xeb7   :  { %1799 = vrot.lane.b32.xlu0 %v3985_v19, %s4075_s26 }
 0xebc   :  { %v3987_v20 = vpop.eup %3986 }
 0xebd   :  { %2050 = vrot.lane.b32.xlu1 %v3987_v20, %s4075_s26  ;;  %v3989_v26 = vpop.eup %3988  ;;  %v4647_v20 = vld [vmem:[%s4843_s3] ss:$0 sm:$0xff] }
 0xebe   :  { %v1793_v15 = vadd.f32 1.0, %v3989_v26  ;;  %v3991_v30 = vpop.eup %3990 }
 0xebf   :  { %v2044_v33 = vadd.f32 1.0, %v3991_v30 }
 0xec0   :  { %3992 = vrcp.f32 %v1793_v15 }
 0xec1   :  { %3994 = vrcp.f32 %v2044_v33 }
 0xeca   :  { %v3993_v28 = vpop.eup %3992 }
 0xecb   :  { %v3995_v17 = vpop.eup %3994  ;;  %v1797_v32 = vmul.f32 %v3993_v28, %v4484_v29 }
 0xecc   :  { %v2048_v42 = vmul.f32 %v3995_v17, %v4490_v59  ;;  %v70_v59 = vld [vmem:[%s4841_s0 + $0x30] sm:$0xff] }
 0xf07   :  { %v1249_v21 = vpop.f32.mrb[10].mxu1 }
 0xf08   :  { %v3508_v22 = vpop.f32.mrb[11].mxu1  ;;  %v1250_v29 = vadd.f32 %v4472_v2, %v1249_v21 }
 0xf0d   :  { %v1526_v12 = vpop.f32.mrb[12].mxu1 }
 0xf0e   :  { %v3539_v23 = vpop.f32.mrb[13].mxu1  ;;  %v1530_v60 = vadd.f32 %v1526_v12, %v167_v58 }
 0xf29   :  { %v1800_v34 = vpop.permute.xlu0 %1799 }
 0xf2a   :  { %v1802_v39 = vmul.f32 %v3993_v28, %v1800_v34  ;;  %v4656_v34 = vld [vmem:[%s4845_s6] ss:$0 sm:$0xff] }
 0xf2c   :  { %1804 = vrot.lane.b32.xlu0 %v1802_v39, %s4076_s27  ;;  %v153_v39 = vmul.f32 %v4656_v34, %v4461_v36 }
 0xf2f   :  { %v2051_v24 = vpop.permute.xlu1 %2050 }
 0xf30   :  { %v2053_v27 = vmul.f32 %v3995_v17, %v2051_v24  ;;  %v4663_v24 = vld [vmem:[%s4846_s8] ss:$0 sm:$0xff] }
 0xf32   :  { %2055 = vrot.lane.b32.xlu1 %v2053_v27, %s4076_s27  ;;  %v168_v27 = vadd.f32 %v4663_v24, %v153_v39 }
 0xf9e   :  { %v1805_v40 = vpop.permute.xlu0 %1804 }
 0xf9f   :  { %v4568_v41 = vadd.f32 %v1805_v40, %v1797_v32 }
 0xfa1   :  { %3996 = vtanh.f32 %v4568_v41 }
 0xfa4   :  { %v2056_v44 = vpop.permute.xlu1 %2055 }
 0xfa5   :  { %v4572_v46 = vadd.f32 %v2056_v44, %v2048_v42 }
 0xfa7   :  { %3998 = vtanh.f32 %v4572_v46 }
 0xfa8   :  { %4000 = vtanh.f32 %v1250_v29 }
 0xfa9   :  { %4002 = vtanh.f32 %v1530_v60 }
 0xfab   :  { %v3997_v31 = vpop.eup %3996 }
 0xfac   :  { %1810 = vrot.lane.b32.xlu0 %v3997_v31, %s4077_s21 }
 0xfb1   :  { %v3999_v48 = vpop.eup %3998 }
 0xfb2   :  { %2061 = vrot.lane.b32.xlu1 %v3999_v48, %s4077_s21  ;;  %v4001_v56 = vpop.eup %4000 }
 0xfb3   :  { %v4003_v53 = vpop.eup %4002 }
0x101e   :  { %v1811_v49 = vpop.permute.xlu0 %1810 }
0x101f   :  { %v1813_v51 = vmul.f32 %v3993_v28, %v1811_v49 }
0x1021   :  { %2070 = vrot.lane.b32.xlu1 %v1813_v51, %s4075_s26 }
0x1024   :  { %v2062_v52 = vpop.permute.xlu1 %2061 }
0x1025   :  { %v2064_v54 = vmul.f32 %v3995_v17, %v2062_v52  ;;  %105 = vperm.xlu1 %3901, %v70_v59  }
0x1027   :  { %2066 = vrot.lane.b32.xlu0 %v2064_v54, %s4078_s22  ;;  %v4687_v54 = vld [vmem:[%s4847_s9 + $0x20] sm:$0xff] }
0x102b   :  { %1533 = vrot.lane.b32.xlu0 %v4001_v56, %s4076_s27 }
0x1093   :  { %v2071_v61 = vpop.permute.xlu1 %2070 }
0x1099   :  { %v2067_v63 = vpop.permute.xlu0 %2066 }
0x109a   :  { %v2073_v1 = vsel %vm172_vm3, %v2067_v63, %v2071_v61 }
0x109b   :  { %3617 = vmatmul.mubr.msk.f32.vlgmr.msra.gmra.mrb[22].mxu0 %vm286_vm2, %v2073_v1 }
0x109c   :  { %3852 = vmatpush3.bf16.msra.mxu0 %v4158_v4  ;;  %3647 = vmatprep.mubr.msk.f32.mxu0 %vm4072_vm0, %v4073_v3 }
0x109d   :  { %v1534_v5 = vpop.permute.xlu0 %1533  ;;  %3645 = vmatprep.subr.mxu0 %v4073_v3 }
0x109e   :  { %v1536_v43 = vsel %vm172_vm3, %v4003_v53, %v1534_v5 }
0x109f   :  { %3551 = vmatmul.mubr.msk.f32.vlgmr.msra.gmra.mrb[14].mxu1 %vm286_vm2, %v1536_v43 }
0x10a0   :  { %3825 = vmatpush3.bf16.msra.mxu1 %v4179_v10  ;;  %3646 = vmatpush3.msk.msra.mxu0 %vm176_vm1, %v4599_v45 }
0x10a1   :  { %3648 = vmatmul.mubr.msk.f32.vlgmr.msra.gmra.mrb[24].mxu0 %vm172_vm3, %v2067_v63  ;;  %3579 = vmatprep.subr.mxu1 %v4073_v3 }
0x10a2   :  { %3581 = vmatprep.mubr.msk.f32.mxu1 %vm4072_vm0, %v4073_v3  ;;  %3853 = vmatprep.subr.bf16.mxu0 %v4071_v0 }
0x10a3   :  { %3855 = vmatpush3.bf16.msra.mxu0 %v4231_v35  ;;  %3660 = vmatprep.mubr.msk.f32.mxu0 %vm4072_vm0, %v4073_v3 }
0x10a4   :  { %3580 = vmatpush3.msk.msra.mxu1 %vm176_vm1, %v4614_v47  ;;  %3856 = vmatprep.subr.bf16.mxu0 %v4071_v0  ;;  %v4633_v6 = vpop.permute.xlu1 %105 }
0x10a5   :  { %3582 = vmatmul.mubr.msk.f32.vlgmr.msra.gmra.mrb[16].mxu1 %vm172_vm3, %v4003_v53  ;;  %3826 = vmatprep.subr.bf16.mxu1 %v4071_v0  ;;  %v125_v14 = vmul.f32 %v4638_v13, %v4633_v6 }
0x10a6   :  { %3828 = vmatpush3.bf16.msra.mxu1 %v4272_v50  ;;  %3594 = vmatprep.mubr.msk.f32.mxu1 %vm4072_vm0, %v4073_v3 }
0x10a7   :  { %3829 = vmatprep.subr.bf16.mxu1 %v4071_v0  ;;  %3858 = vmatpush3.bf16.msra.mxu0 %v4237_v37  ;;  %v140_v21 = vadd.f32 %v4647_v20, %v125_v14 }
0x10a8   :  { %3658 = vmatprep.subr.mxu0 %v4073_v3 }
0x10aa   :  { %3831 = vmatpush3.bf16.msra.mxu1 %v4285_v55 }
0x10ab   :  { %3592 = vmatprep.subr.mxu1 %v4073_v3  ;;  %3659 = vmatpush3.msra.mxu0 %v4245_v38 }
0x10ac   :  { %3868 = vmatprep.subr.bf16.mxu0 %v4071_v0 }
0x10ae   :  { %3593 = vmatpush3.msra.mxu1 %v4300_v57 }
0x10af   :  { %3841 = vmatprep.subr.bf16.mxu1 %v4071_v0 }
0x116e   :  { %v2143_v7 = vpop.f32.mrb[22].mxu0 }
0x116f   :  { %v2144_v16 = vadd.f32 %v4332_v62, %v2143_v7  ;;  %v3618_v38 = vpop.f32.mrb[23].mxu0 }
0x1171   :  { %4004 = vtanh.f32 %v2144_v16  ;;  %v3189_v30 = vmul.f32 -1.442695, %v2144_v16 }
0x1172   :  { %v1606_v18 = vpop.f32.mrb[14].mxu1 }
0x1173   :  { %v1607_v57 = vadd.f32 %v4472_v2, %v1606_v18  ;;  %v3552_v19 = vpop.f32.mrb[15].mxu1 }
0x1174   :  { %v2393_v22 = vpop.f32.mrb[24].mxu0 }
0x1175   :  { %4006 = vtanh.f32 %v1607_v57  ;;  %v2397_v8 = vadd.f32 %v2393_v22, %v140_v21  ;;  %v3649_v12 = vpop.f32.mrb[25].mxu0  ;;  %v154_v21 = vmul.f32 %v4656_v34, %v4557_v11 }
0x1177   :  { %4008 = vtanh.f32 %v2397_v8  ;;  %v3195_v33 = vmul.f32 -1.442695, %v2397_v8  ;;  %v169_v22 = vadd.f32 %v4663_v24, %v154_v21 }
0x1178   :  { %v1883_v23 = vpop.f32.mrb[16].mxu1  ;;  %4010 = vpow2.f32 %v3189_v30 }
0x1179   :  { %v3583_v62 = vpop.f32.mrb[17].mxu1  ;;  %4012 = vpow2.f32 %v3195_v33  ;;  %v1887_v40 = vadd.f32 %v1883_v23, %v168_v27 }
0x117b   :  { %v4005_v25 = vpop.eup %4004 }
0x117c   :  { %2156 = vrot.lane.b32.xlu0 %v4005_v25, %s4075_s26 }
0x117f   :  { %v4007_v26 = vpop.eup %4006 }
0x1180   :  { %1890 = vrot.lane.b32.xlu0 %v4007_v26, %s4076_s27 }
0x1181   :  { %v4009_v15 = vpop.eup %4008 }
0x1182   :  { %2407 = vrot.lane.b32.xlu1 %v4009_v15, %s4075_s26  ;;  %v4011_v28 = vpop.eup %4010  ;;  %v4756_v15 = vld [vmem:[%s4848_s5] ss:$0 sm:$0xff] }
0x1183   :  { %v2150_v17 = vadd.f32 1.0, %v4011_v28  ;;  %v4013_v32 = vpop.eup %4012 }
0x1184   :  { %v2401_v42 = vadd.f32 1.0, %v4013_v32 }
0x1185   :  { %4014 = vrcp.f32 %v2150_v17 }
0x1186   :  { %4016 = vtanh.f32 %v1887_v40 }
0x1187   :  { %4018 = vrcp.f32 %v2401_v42 }
0x118f   :  { %v4015_v44 = vpop.eup %4014 }
0x1190   :  { %v4017_v36 = vpop.eup %4016  ;;  %v2154_v56 = vmul.f32 %v4015_v44, %v4568_v41 }
0x1191   :  { %v4019_v51 = vpop.eup %4018 }
0x1192   :  { %v2405_v60 = vmul.f32 %v4019_v51, %v4572_v46  ;;  %v71_v46 = vld [vmem:[%s4841_s0 + $0x38] sm:$0xff] }
0x11ee   :  { %v2157_v31 = vpop.permute.xlu0 %2156 }
0x11ef   :  { %v2159_v48 = vmul.f32 %v4015_v44, %v2157_v31 }
0x11f1   :  { %2161 = vrot.lane.b32.xlu1 %v2159_v48, %s4076_s27 }
0x11f2   :  { %v1891_v29 = vpop.permute.xlu0 %1890 }
0x11f3   :  { %v1893_v49 = vsel %vm172_vm3, %v4017_v36, %v1891_v29 }
0x11f4   :  { %v2408_v59 = vpop.permute.xlu1 %2407  ;;  %3595 = vmatmul.mubr.msk.f32.vlgmr.msra.gmra.mrb[18].mxu1 %vm286_vm2, %v1893_v49 }
0x11f5   :  { %v2410_v52 = vmul.f32 %v4019_v51, %v2408_v59  ;;  %3843 = vmatpush3.bf16.msra.mxu1 %v4179_v10  ;;  %3625 = vmatprep.mubr.msk.f32.mxu1 %vm4072_vm0, %v4073_v3 }
0x11f6   :  { %3623 = vmatprep.subr.mxu1 %v4073_v3 }
0x11f7   :  { %2412 = vrot.lane.b32.xlu0 %v2410_v52, %s4076_s27 }
0x11f9   :  { %3624 = vmatpush3.msk.msra.mxu1 %vm176_vm1, %v4614_v47 }
0x11fa   :  { %3626 = vmatmul.mubr.msk.f32.vlgmr.msra.gmra.mrb[20].mxu1 %vm172_vm3, %v4017_v36  ;;  %3844 = vmatprep.subr.bf16.mxu1 %v4071_v0 }
0x11fb   :  { %3846 = vmatpush3.bf16.msra.mxu1 %v4272_v50  ;;  %3638 = vmatprep.mubr.msk.f32.mxu1 %vm4072_vm0, %v4073_v3 }
0x11fc   :  { %3847 = vmatprep.subr.bf16.mxu1 %v4071_v0 }
0x11ff   :  { %3849 = vmatpush3.bf16.msra.mxu1 %v4285_v55 }
0x1200   :  { %3636 = vmatprep.subr.mxu1 %v4073_v3 }
0x1203   :  { %3637 = vmatpush3.msra.mxu1 %v4687_v54 }
0x1204   :  { %3859 = vmatprep.subr.bf16.mxu1 %v4071_v0 }
0x1263   :  { %v2162_v9 = vpop.permute.xlu1 %2161 }
0x1264   :  { %v4692_v58 = vadd.f32 %v2162_v9, %v2154_v56 }
0x1266   :  { %4020 = vtanh.f32 %v4692_v58 }
0x1269   :  { %v2413_v61 = vpop.permute.xlu0 %2412 }
0x126a   :  { %v4696_v63 = vadd.f32 %v2413_v61, %v2405_v60 }
0x126c   :  { %4022 = vtanh.f32 %v4696_v63 }
0x1270   :  { %v4021_v1 = vpop.eup %4020 }
0x1271   :  { %2167 = vrot.lane.b32.xlu1 %v4021_v1, %s4077_s21 }
0x1276   :  { %v4023_v53 = vpop.eup %4022 }
0x1277   :  { %2418 = vrot.lane.b32.xlu0 %v4023_v53, %s4077_s21 }
0x12c7   :  { %v1963_v5 = vpop.f32.mrb[18].mxu1 }
0x12c8   :  { %v3596_v41 = vpop.f32.mrb[19].mxu1  ;;  %v1964_v14 = vadd.f32 %v4472_v2, %v1963_v5  ;;  %v155_v5 = vmul.f32 %v4656_v34, %v4633_v6 }
0x12ca   :  { %4024 = vtanh.f32 %v1964_v14  ;;  %v170_v41 = vadd.f32 %v4663_v24, %v155_v5 }
0x12cd   :  { %v2240_v43 = vpop.f32.mrb[20].mxu1 }
0x12ce   :  { %v3627_v7 = vpop.f32.mrb[21].mxu1  ;;  %v2244_v8 = vadd.f32 %v2240_v43, %v169_v22 }
0x12d0   :  { %4026 = vtanh.f32 %v2244_v8 }
0x12d4   :  { %v4025_v19 = vpop.eup %4024 }
0x12da   :  { %v4027_v25 = vpop.eup %4026 }
0x12e3   :  { %v2168_v16 = vpop.permute.xlu1 %2167 }
0x12e4   :  { %v2170_v38 = vmul.f32 %v4015_v44, %v2168_v16 }
0x12e6   :  { %2427 = vrot.lane.b32.xlu0 %v2170_v38, %s4075_s26 }
0x12e9   :  { %v2419_v18 = vpop.permute.xlu0 %2418 }
0x12ea   :  { %v2421_v57 = vmul.f32 %v4019_v51, %v2419_v18  ;;  %110 = vperm.xlu0 %3900, %v71_v46  }
0x12ec   :  { %2423 = vrot.lane.b32.xlu1 %v2421_v57, %s4078_s22 }
0x12f0   :  { %2247 = vrot.lane.b32.xlu1 %v4025_v19, %s4076_s27 }
0x1358   :  { %v2428_v12 = vpop.permute.xlu0 %2427 }
0x135e   :  { %v2424_v23 = vpop.permute.xlu1 %2423 }
0x135f   :  { %v2430_v62 = vsel %vm172_vm3, %v2424_v23, %v2428_v12 }
0x1360   :  { %3661 = vmatmul.mubr.msk.f32.vlgmr.msra.gmra.mrb[26].mxu0 %vm286_vm2, %v2430_v62 }
0x1361   :  { %3870 = vmatpush3.bf16.msra.mxu0 %v4158_v4  ;;  %3691 = vmatprep.mubr.msk.f32.mxu0 %vm4072_vm0, %v4073_v3  ;;  %v4069_v4 = vld [vmem:[%s4844_s4 + $0x20] sm:$0xff] }
0x1362   :  { %v2248_v26 = vpop.permute.xlu1 %2247  ;;  %3689 = vmatprep.subr.mxu0 %v4073_v3 }
0x1363   :  { %v2250_v11 = vsel %vm172_vm3, %v4027_v25, %v2248_v26 }
0x1364   :  { %3639 = vmatmul.mubr.msk.f32.vlgmr.msra.gmra.mrb[22].mxu1 %vm286_vm2, %v2250_v11 }
0x1365   :  { %3861 = vmatpush3.bf16.msra.mxu1 %v4179_v10  ;;  %3690 = vmatpush3.msk.msra.mxu0 %vm176_vm1, %v4599_v45 }
0x1366   :  { %3692 = vmatmul.mubr.msk.f32.vlgmr.msra.gmra.mrb[28].mxu0 %vm172_vm3, %v2424_v23  ;;  %3667 = vmatprep.subr.mxu1 %v4073_v3 }
0x1367   :  { %3669 = vmatprep.mubr.msk.f32.mxu1 %vm4072_vm0, %v4073_v3  ;;  %3871 = vmatprep.subr.bf16.mxu0 %v4071_v0 }
0x1368   :  { %3873 = vmatpush3.bf16.msra.mxu0 %v4231_v35  ;;  %3704 = vmatprep.mubr.msk.f32.mxu0 %vm4072_vm0, %v4073_v3 }
0x1369   :  { %3668 = vmatpush3.msk.msra.mxu1 %vm176_vm1, %v4614_v47  ;;  %3874 = vmatprep.subr.bf16.mxu0 %v4071_v0  ;;  %v4749_v35 = vpop.permute.xlu0 %110 }
0x136a   :  { %3670 = vmatmul.mubr.msk.f32.vlgmr.msra.gmra.mrb[24].mxu1 %vm172_vm3, %v4027_v25  ;;  %3862 = vmatprep.subr.bf16.mxu1 %v4071_v0  ;;  %v126_v45 = vmul.f32 %v4638_v13, %v4749_v35  ;;  %v156_v11 = vmul.f32 %v4656_v34, %v4749_v35 }
0x136b   :  { %3864 = vmatpush3.bf16.msra.mxu1 %v4272_v50  ;;  %3682 = vmatprep.mubr.msk.f32.mxu1 %vm4072_vm0, %v4073_v3 }
0x136c   :  { %3865 = vmatprep.subr.bf16.mxu1 %v4071_v0  ;;  %3876 = vmatpush3.bf16.msra.mxu0 %v4237_v37  ;;  %v141_v17 = vadd.f32 %v4647_v20, %v126_v45 }
0x136d   :  { %3702 = vmatprep.subr.mxu0 %v4073_v3 }
0x136f   :  { %3867 = vmatpush3.bf16.msra.mxu1 %v4285_v55 }
0x1370   :  { %3680 = vmatprep.subr.mxu1 %v4073_v3  ;;  %3703 = vmatpush3.msra.mxu0 %v4069_v4  ;;  %v171_v4 = vadd.f32 %v4663_v24, %v156_v11 }
0x1371   :  { %3886 = vmatprep.subr.bf16.mxu0 %v4071_v0 }
0x1373   :  { %3681 = vmatpush3.msra.mxu1 %v4687_v54 }
0x1374   :  { %3877 = vmatprep.subr.bf16.mxu1 %v4071_v0 }
0x1433   :  { %v2500_v37 = vpop.f32.mrb[26].mxu0 }
0x1434   :  { %v2501_v30 = vadd.f32 %v4756_v15, %v2500_v37  ;;  %v3662_v33 = vpop.f32.mrb[27].mxu0 }
0x1436   :  { %4028 = vtanh.f32 %v2501_v30  ;;  %v3197_v48 = vmul.f32 -1.442695, %v2501_v30 }
0x1437   :  { %v2320_v28 = vpop.f32.mrb[22].mxu1 }
0x1438   :  { %v3640_v39 = vpop.f32.mrb[23].mxu1  ;;  %v2321_v20 = vadd.f32 %v4472_v2, %v2320_v28 }
0x1439   :  { %v2750_v27 = vpop.f32.mrb[28].mxu0 }
0x143a   :  { %v2754_v32 = vadd.f32 %v2750_v27, %v141_v17  ;;  %v3693_v40 = vpop.f32.mrb[29].mxu0 }
0x143c   :  { %4030 = vtanh.f32 %v2754_v32  ;;  %v3203_v36 = vmul.f32 -1.442695, %v2754_v32 }
0x143d   :  { %v2597_v42 = vpop.f32.mrb[24].mxu1  ;;  %4032 = vpow2.f32 %v3197_v48 }
0x143e   :  { %v3671_v44 = vpop.f32.mrb[25].mxu1  ;;  %4034 = vpow2.f32 %v3203_v36  ;;  %v2601_v43 = vadd.f32 %v2597_v42, %v170_v41 }
0x1440   :  { %v4029_v13 = vpop.eup %4028 }
0x1441   :  { %2513 = vrot.lane.b32.xlu1 %v4029_v13, %s4075_s26 }
0x1446   :  { %v4031_v31 = vpop.eup %4030 }
0x1447   :  { %2764 = vrot.lane.b32.xlu0 %v4031_v31, %s4075_s26  ;;  %v4033_v29 = vpop.eup %4032 }
0x1448   :  { %v2507_v49 = vadd.f32 1.0, %v4033_v29  ;;  %v4035_v51 = vpop.eup %4034  ;;  %v3048_v29 = vld [vmem:[%s4850_s11] sm:$0xff] }
0x1449   :  { %v2758_v59 = vadd.f32 1.0, %v4035_v51  ;;  %v3050_v51 = vld [vmem:[%s4850_s11 + $0x10] sm:$0xff] }
0x144a   :  { %4036 = vrcp.f32 %v2507_v49  ;;  %v3049_v49 = vld [vmem:[%s4850_s11 + $0x8] sm:$0xff] }
0x144b   :  { %4038 = vtanh.f32 %v2321_v20  ;;  %v3887_v20 = vpack.c.bf16 %v3049_v49, %v3048_v29 }
0x144c   :  { %4040 = vrcp.f32 %v2758_v59  ;;  %v3051_v59 = vld [vmem:[%s4850_s11 + $0x18] sm:$0xff] }
0x144d   :  { %4042 = vtanh.f32 %v2601_v43 }
0x1454   :  { %v4037_v52 = vpop.eup %4036 }
0x1455   :  { %v4039_v60 = vpop.eup %4038  ;;  %v2511_v7 = vmul.f32 %v4037_v52, %v4692_v58 }
0x1456   :  { %v4041_v61 = vpop.eup %4040 }
0x1457   :  { %v4043_v38 = vpop.eup %4042  ;;  %v2762_v57 = vmul.f32 %v4041_v61, %v4696_v63 }
0x14b3   :  { %v2514_v56 = vpop.permute.xlu1 %2513 }
0x14b4   :  { %v2516_v9 = vmul.f32 %v4037_v52, %v2514_v56 }
0x14b6   :  { %2518 = vrot.lane.b32.xlu1 %v2516_v9, %s4076_s27  ;;  %v3052_v9 = vld [vmem:[%s4850_s11 + $0x20] sm:$0xff] }
0x14b9   :  { %v2765_v1 = vpop.permute.xlu0 %2764 }
0x14ba   :  { %v2767_v53 = vmul.f32 %v4041_v61, %v2765_v1  ;;  %2604 = vrot.lane.b32.xlu1 %v4039_v60, %s4076_s27  ;;  %v18_v60 = vstv %s4851_s12 }
0x14bb   :  { %19 = vst [vmem:[#allocation2] sm:$0x1] %v18_v60 }
0x14bc   :  { %2769 = vrot.lane.b32.xlu0 %v2767_v53, %s4076_s27 }
0x14c2   :  { %v3209_v5 = vld [vmem:[#allocation2] ss:$0 sm:$0xff] }
0x1528   :  { %v2519_v14 = vpop.permute.xlu1 %2518 }
0x1529   :  { %v4770_v16 = vadd.f32 %v2519_v14, %v2511_v7 }
0x152b   :  { %4044 = vtanh.f32 %v4770_v16 }
0x152c   :  { %v2605_v46 = vpop.permute.xlu1 %2604 }
0x152d   :  { %v2607_v18 = vsel %vm172_vm3, %v4043_v38, %v2605_v46 }
0x152e   :  { %v2770_v19 = vpop.permute.xlu0 %2769  ;;  %3683 = vmatmul.mubr.msk.f32.vlgmr.msra.gmra.mrb[26].mxu1 %vm286_vm2, %v2607_v18 }
0x152f   :  { %v2772_v6 = vadd.f32 %v2770_v19, %v2762_v57  ;;  %3879 = vmatpush3.bf16.msra.mxu1 %v4179_v10  ;;  %3713 = vmatprep.mubr.msk.f32.mxu1 %vm4072_vm0, %v4073_v3 }
0x1530   :  { %3711 = vmatprep.subr.mxu1 %v4073_v3 }
0x1531   :  { %4046 = vtanh.f32 %v2772_v6 }
0x1533   :  { %3712 = vmatpush3.msk.msra.mxu1 %vm176_vm1, %v4614_v47 }
0x1534   :  { %3714 = vmatmul.mubr.msk.f32.vlgmr.msra.gmra.mrb[28].mxu1 %vm172_vm3, %v4043_v38  ;;  %3880 = vmatprep.subr.bf16.mxu1 %v4071_v0 }
0x1535   :  { %v4045_v58 = vpop.eup %4044  ;;  %3882 = vmatpush3.bf16.msra.mxu1 %v4272_v50  ;;  %3726 = vmatprep.mubr.msk.f32.mxu1 %vm4072_vm0, %v4073_v3 }
0x1536   :  { %2524 = vrot.lane.b32.xlu0 %v4045_v58, %s4077_s21  ;;  %3883 = vmatprep.subr.bf16.mxu1 %v4071_v0 }
0x1539   :  { %3885 = vmatpush3.bf16.msra.mxu1 %v4285_v55 }
0x153a   :  { %3724 = vmatprep.subr.mxu1 %v4073_v3 }
0x153b   :  { %v4047_v10 = vpop.eup %4046 }
0x153c   :  { %2775 = vrot.lane.b32.xlu1 %v4047_v10, %s4077_s21 }
0x153d   :  { %3725 = vmatpush3.msra.mxu1 %v4687_v54 }
0x15a8   :  { %v2525_v47 = vpop.permute.xlu0 %2524 }
0x15a9   :  { %v2527_v63 = vmul.f32 %v4037_v52, %v2525_v47 }
0x15ab   :  { %2784 = vrot.lane.b32.xlu1 %v2527_v63, %s4075_s26 }
0x15ae   :  { %v2776_v50 = vpop.permute.xlu1 %2775 }
0x15af   :  { %v2778_v21 = vmul.f32 %v4041_v61, %v2776_v50 }
0x15b1   :  { %2780 = vrot.lane.b32.xlu0 %v2778_v21, %s4078_s22 }
0x1601   :  { %v2677_v22 = vpop.f32.mrb[26].mxu1 }
0x1602   :  { %v2678_v8 = vadd.f32 %v4472_v2, %v2677_v22  ;;  %v3684_v12 = vpop.f32.mrb[27].mxu1 }
0x1604   :  { %4048 = vtanh.f32 %v2678_v8 }
0x1607   :  { %v2954_v55 = vpop.f32.mrb[28].mxu1 }
0x1608   :  { %v3715_v23 = vpop.f32.mrb[29].mxu1  ;;  %v2958_v37 = vadd.f32 %v2954_v55, %v171_v4 }
0x160a   :  { %4050 = vtanh.f32 %v2958_v37 }
0x160e   :  { %v4049_v62 = vpop.eup %4048 }
0x160f   :  { %2961 = vrot.lane.b32.xlu0 %v4049_v62, %s4076_s27 }
0x1614   :  { %v4051_v45 = vpop.eup %4050 }
0x161d   :  { %v2785_v25 = vpop.permute.xlu1 %2784 }
0x1623   :  { %v2781_v54 = vpop.permute.xlu0 %2780 }
0x1624   :  { %v2787_v26 = vsel %vm172_vm3, %v2781_v54, %v2785_v25 }
0x1625   :  { %3705 = vmatmul.mubr.msk.f32.vlgmr.msra.gmra.mrb[30].mxu0 %vm286_vm2, %v2787_v26 }
0x1626   :  { %3739 = vmatprep.mubr.msk.f32.mxu0 %vm4072_vm0, %v4073_v3  ;;  %3888 = vmatpush3.bf16.msra.mxu0 %v3887_v20 }
0x1627   :  { %3889 = vmatprep.subr.bf16.mxu0 %v4071_v0 }
0x1681   :  { %v2962_v30 = vpop.permute.xlu0 %2961 }
0x1682   :  { %v2964_v33 = vsel %vm172_vm3, %v4051_v45, %v2962_v30 }
0x1683   :  { %3727 = vmatmul.mubr.msk.f32.vlgmr.msra.gmra.mrb[30].mxu1 %vm286_vm2, %v2964_v33 }
0x16f8   :  { %v2857_v28 = vpop.f32.mrb[30].mxu0 }
0x16f9   :  { %v2858_v39 = vadd.f32 %v4756_v15, %v2857_v28  ;;  %v3706_v17 = vpop.f32.mrb[31].mxu0 }
0x16fb   :  { %4052 = vtanh.f32 %v2858_v39  ;;  %v3205_v35 = vmul.f32 -1.442695, %v2858_v39 }
0x16fd   :  { %4054 = vpow2.f32 %v3205_v35 }
0x1705   :  { %v4053_v27 = vpop.eup %4052 }
0x1706   :  { %2870 = vrot.lane.b32.xlu1 %v4053_v27, %s4075_s26 }
0x1707   :  { %v4055_v24 = vpop.eup %4054 }
0x1708   :  { %v2864_v40 = vadd.f32 1.0, %v4055_v24 }
0x170a   :  { %4056 = vrcp.f32 %v2864_v40 }
0x1714   :  { %v4057_v42 = vpop.eup %4056 }
0x1715   :  { %v2868_v31 = vmul.f32 %v4057_v42, %v4770_v16 }
0x1756   :  { %v3034_v32 = vpop.f32.mrb[30].mxu1 }
0x1757   :  { %v3728_v34 = vpop.f32.mrb[31].mxu1  ;;  %v3035_v36 = vadd.f32 %v4472_v2, %v3034_v32  ;;  %v3890_v2 = vpack.c.bf16 %v3051_v59, %v3050_v51 }
0x1759   :  { %3891 = vmatpush3.bf16.msra.mxu0 %v3890_v2 }
0x175a   :  { %3737 = vmatprep.subr.mxu0 %v4073_v3 }
0x175d   :  { %3738 = vmatpush3.msra.mxu0 %v3052_v9 }
0x1778   :  { %v2871_v44 = vpop.permute.xlu1 %2870 }
0x1779   :  { %v2873_v13 = vmul.f32 %v4057_v42, %v2871_v44 }
0x177b   :  { %2875 = vrot.lane.b32.xlu0 %v2873_v13, %s4076_s27 }
0x17ed   :  { %v2876_v15 = vpop.permute.xlu0 %2875 }
0x17ee   :  { %v2878_v48 = vadd.f32 %v2876_v15, %v2868_v31 }
0x17f0   :  { %4058 = vtanh.f32 %v2878_v48 }
0x17f1   :  { %4060 = vtanh.f32 %v3035_v36 }
0x17fa   :  { %v4059_v52 = vpop.eup %4058 }
0x17fb   :  { %2881 = vrot.lane.b32.xlu1 %v4059_v52, %s4077_s21  ;;  %v4061_v56 = vpop.eup %4060 }
0x17ff   :  { %3044 = vrot.lane.b32.xlu1 %v4061_v56, %s4076_s27 }
0x186d   :  { %v2882_v0 = vpop.permute.xlu1 %2881 }
0x186e   :  { %v2884_v61 = vmul.f32 %v4057_v42, %v2882_v0 }
0x1870   :  { %3040 = vrot.lane.b32.xlu0 %v2884_v61, %s4078_s22 }
0x1871   :  { %v3045_v3 = vpop.permute.xlu1 %3044 }
0x18e2   :  { %v3041_v1 = vpop.permute.xlu0 %3040 }
0x18e3   :  { %v3047_v53 = vsel %vm172_vm3, %v3041_v1, %v3045_v3 }
0x18e4   :  { %3740 = vmatmul.mubr.msk.f32.vlgmr.msra.gmra.mrb[32].mxu0 %vm286_vm2, %v3047_v53 }
0x19b7   :  { %v3129_v41 = vpop.f32.mrb[32].mxu0 }
0x19b8   :  { %v3130_v43 = vadd.f32 %v3209_v5, %v3129_v41  ;;  %v3741_v7 = vpop.f32.mrb[33].mxu0 }
0x19ba   :  { %v3133_v14 = vmul.f32 0.5, %v3130_v43 }
0x19bc   :  { %v3134_v16 = vmax.f32 %v3133_v14, 0.0 }
0x19be   :  { %3136 = vst.msk [vmem:[%s4852_s13] sm:$0xff] %vm3135_vm4, %v3134_v16 }

</bundles_post_ra>
